<compile_context>
chip_gen: v6e
topology: v6e:2x2x1
jax: 0.10.0
libtpu: 0.0.40
codegen_flags: <defaults>
</compile_context>

<pallas_src>
import functools

import jax
import jax.numpy as jnp
from jax.experimental import pallas as pl
from jax.experimental.pallas import tpu as pltpu


# ---------------------------------------------------------------------------
# Tiling policy
# ---------------------------------------------------------------------------
def _pick_batch_tile(B, N, f0, f_max, k_max, n_layers, rows_target=1024,
                     vmem_budget_bytes=24 * (1 << 20)):
    """Graphs per block.

    Targets ~rows_target matmul rows (HBM-roofline sweet spot), keeps the
    double-buffered input streams plus the main in-kernel temporaries under a
    conservative 24 MiB (below the 32 MiB default scoped VMEM; safe on v7x's
    64 MiB).  Only when the whole batch would collapse into a single grid step
    is it split in two, so a v7x megacore can shard the batch axis across its
    two TensorCores; on single-TC v5e/v6e blocks stay as large as possible.
    """
    stream = 2 * 4 * N * (N + f0 + n_layers * k_max)          # double-buffered f32 inputs
    temps = 4 * N * (N * f_max + 4 * k_max)                    # agg product + K-wide slabs
    per_graph = stream + temps
    bt = max(1, min(B,
                    max(1, rows_target // max(N, 1)),
                    max(1, vmem_budget_bytes // max(per_graph, 1))))
    if B >= 2 and pl.cdiv(B, bt) < 2:
        bt = pl.cdiv(B, 2)     # give a v7x megacore a second grid step
    return bt


# ---------------------------------------------------------------------------
# Fused kernel: all MP layers + readout pools + NNet head in one pallas_call
# ---------------------------------------------------------------------------
def _m2m_fused_kernel(*refs, n_layers, compute_dtype, vpu_aggregation):
    g_ref, h0_ref = refs[0], refs[1]
    lrefs = refs[2:2 + 4 * n_layers]                     # per layer: wh, me_bias, deg_rep, s_mat
    rrefs = refs[2 + 4 * n_layers:3 + 5 * n_layers]      # readout weights, n_layers + 1 of them
    w0, b0, w1, b1, w2, b2, w3, b3 = (r[...] for r in refs[3 + 5 * n_layers:-1])
    o_ref = refs[-1]

    bt, n_nodes, _ = g_ref.shape
    rows = bt * n_nodes

    g = g_ref[...]                                                  # (bt, N, N) f32 0/1
    # node degrees: computed ONCE for all layers (exact sums of 0/1 values)
    deg = jnp.sum(g, axis=-1, keepdims=True).reshape(rows, 1)       # (rows, 1) f32

    def aggregate(h):
        # mh[b,v,:] = sum_w g[b,v,w] * h[b,w,:]
        if vpu_aggregation:
            # VPU/XLU broadcast-multiply-reduce: frees the MXU (which handles the
            # stacked update matmul) — the per-graph (N,N)@(N,F) matmuls would use
            # only a few percent of the MXU width for small N.
            prod = g[:, :, :, None] * h[:, None, :, :]              # (bt, N, N, F) f32
            mh = jnp.sum(prod, axis=2)                              # (bt, N, F) f32
        else:
            mh = jnp.einsum("bvw,bwf->bvf", g, h,
                            preferred_element_type=jnp.float32)
        return mh.reshape(rows, -1)

    def pool(h_flat, r_ref):
        # softmax(h W) pooled over nodes; rows whose projection is exactly zero masked
        aux = jnp.dot(h_flat.astype(compute_dtype), r_ref[...],
                      preferred_element_type=jnp.float32)           # (rows, hidden) f32
        nz = jnp.any(aux != 0.0, axis=-1, keepdims=True)            # (rows, 1) bool
        mx = jnp.max(aux, axis=-1, keepdims=True)
        ex = jnp.exp(aux - mx)
        soft = jnp.where(nz, ex / jnp.sum(ex, axis=-1, keepdims=True), 0.0)
        hidden = soft.shape[-1]
        return jnp.sum(soft.reshape(bt, n_nodes, hidden), axis=1)   # (bt, hidden) f32

    h = h0_ref[...].astype(jnp.float32)                             # (bt, N, F0)
    pooled = pool(h.reshape(rows, -1), rrefs[0])

    for t in range(n_layers):                                       # static unroll
        wh_ref, meb_ref, degrep_ref, smat_ref = lrefs[4 * t:4 * t + 4]
        out_t = smat_ref.shape[-1]

        mh = aggregate(h)                                            # (rows, F_t) f32
        # one stacked, lane-dense update matmul over all degrees + edge bias
        y = (jnp.dot(mh.astype(compute_dtype), wh_ref[...],
                     preferred_element_type=jnp.float32)
             + meb_ref[...].reshape(rows, -1))                       # (rows, n_deg*out_t)
        # fused degree select: keeps only this node's degree slice (or nothing)
        y = jnp.where(deg == degrep_ref[...], y, 0.0)
        # degree-axis reduction via small summation matmul (exact: other slices are 0)
        h_flat = jnp.dot(y, smat_ref[...],
                         preferred_element_type=jnp.float32)         # (rows, out_t) f32
        h = h_flat.reshape(bt, n_nodes, out_t)
        pooled = pooled + pool(h_flat, rrefs[t + 1])

    # NNet head (hidden -> 128 -> 256 -> 128 -> target), f32 activations
    x = jnp.maximum(jnp.dot(pooled, w0, preferred_element_type=jnp.float32) + b0, 0.0)
    x = jnp.maximum(jnp.dot(x, w1, preferred_element_type=jnp.float32) + b1, 0.0)
    x = jnp.maximum(jnp.dot(x, w2, preferred_element_type=jnp.float32) + b2, 0.0)
    x = jnp.dot(x, w3, preferred_element_type=jnp.float32) + b3
    o_ref[...] = x[:, None, :].astype(o_ref.dtype)


# ---------------------------------------------------------------------------
# Parameter init + full forward
# ---------------------------------------------------------------------------
def init_m2m_params(key, d, in_n, out_update, hidden, target):
    degrees = tuple(float(x) for x in d if x != 0)   # degree 0 filtered (zero update anyway)
    n_deg = len(degrees)
    f_node, f_edge = in_n
    n_layers = len(out_update)
    keys = jax.random.split(key, 2 * n_layers + (n_layers + 1) + 4)
    ki = iter(keys)

    update = []
    for t in range(n_layers):
        f_in = f_node if t == 0 else out_update[t - 1]
        out_t = out_update[t]
        hh = 0.1 * jax.random.normal(next(ki), (n_deg, f_in, out_t), dtype=jnp.float32)
        he = 0.1 * jax.random.normal(next(ki), (n_deg, f_edge, out_t), dtype=jnp.float32)
        # stack per-degree matrices along the output (lane) dim: one 128-wide matmul
        wh = jnp.transpose(hh, (1, 0, 2)).reshape(f_in, n_deg * out_t)
        we = jnp.transpose(he, (1, 0, 2)).reshape(f_edge, n_deg * out_t)
        deg_rep = jnp.repeat(jnp.asarray(degrees, jnp.float32), out_t)[None, :]
        s_mat = jnp.tile(jnp.eye(out_t, dtype=jnp.float32), (n_deg, 1))
        update.append((wh, we, deg_rep, s_mat))

    readout_w = []
    for l in range(n_layers + 1):
        f_l = f_node if l == 0 else out_update[l - 1]
        readout_w.append(0.1 * jax.random.normal(next(ki), (f_l, hidden), dtype=jnp.float32))

    sizes = [hidden, 128, 256, 128, target]
    nnet_params = []
    for i in range(4):
        w = 0.1 * jax.random.normal(next(ki), (sizes[i], sizes[i + 1]), dtype=jnp.float32)
        b = jnp.zeros((1, sizes[i + 1]), dtype=jnp.float32)
        nnet_params.append((w, b))

    return dict(degrees=degrees, update=update, readout_w=readout_w, nnet=nnet_params)


def m2m_forward(params, g, h_in, e, out_type="regression", compute_dtype=jnp.bfloat16):
    B, N, F0 = h_in.shape
    n_layers = len(params["update"])
    target = params["nnet"][-1][0].shape[1]

    g32 = g.astype(jnp.float32)
    h32 = h_in.astype(jnp.float32)
    # Edge messages depend only on (g, e); folded per layer into a lane-dense
    # (B, N, K) additive bias in the wrapper so the E=3 lane-sparse tensor never
    # enters a kernel and the second in-kernel matmul disappears.
    me = jnp.einsum("bvw,bvwe->bve", g32, e.astype(jnp.float32))

    k_max = max(wh.shape[-1] for (wh, _, _, _) in params["update"])
    f_max = max([F0] + [sm.shape[-1] for (_, _, _, sm) in params["update"]])
    bt = _pick_batch_tile(B, N, F0, f_max, k_max, n_layers)
    grid = (pl.cdiv(B, bt),)

    args = [g32, h32]
    in_specs = [
        pl.BlockSpec((bt, N, N), lambda b: (b, 0, 0)),
        pl.BlockSpec((bt, N, F0), lambda b: (b, 0, 0)),
    ]
    for (wh, we, deg_rep, s_mat) in params["update"]:
        k_t = wh.shape[-1]
        meb = jnp.einsum("bve,ek->bvk", me, we)            # tiny XLA matmul (wrapper side)
        args += [wh.astype(compute_dtype), meb, deg_rep, s_mat]
        in_specs += [
            pl.BlockSpec(wh.shape, lambda b: (0, 0)),
            pl.BlockSpec((bt, N, k_t), lambda b: (b, 0, 0)),
            pl.BlockSpec(deg_rep.shape, lambda b: (0, 0)),
            pl.BlockSpec(s_mat.shape, lambda b: (0, 0)),
        ]
    for w_l in params["readout_w"]:
        args.append(w_l.astype(compute_dtype))
        in_specs.append(pl.BlockSpec(w_l.shape, lambda b: (0, 0)))
    for (w, b) in params["nnet"]:
        args += [w, b]
        in_specs += [pl.BlockSpec(w.shape, lambda b: (0, 0)),
                     pl.BlockSpec(b.shape, lambda b: (0, 0))]

    kernel = functools.partial(_m2m_fused_kernel, n_layers=n_layers,
                               compute_dtype=compute_dtype,
                               vpu_aggregation=(N <= 32))
    out = pl.pallas_call(
        kernel,
        out_shape=jax.ShapeDtypeStruct((B, 1, target), jnp.float32),
        grid=grid,
        in_specs=in_specs,
        out_specs=pl.BlockSpec((bt, 1, target), lambda b: (b, 0, 0)),
        compiler_params=pltpu.CompilerParams(dimension_semantics=("parallel",)),
    )(*args)

    res = out.reshape(B, target)
    if out_type == "classification":
        res = jax.nn.log_softmax(res, axis=-1)
    return res


# ---------------------------------------------------------------------------
# Pure-JAX reference (for a sanity check in __main__)
# ---------------------------------------------------------------------------
def m2m_reference(params, g, h_in, e):
    g = g.astype(jnp.float32)
    me = jnp.einsum("bvw,bvwe->bve", g, e)
    deg = jnp.sum(g, axis=-1)
    h, hs = h_in, [h_in]
    for wh, we, deg_rep, s_mat in params["update"]:
        od = s_mat.shape[-1]
        mh = jnp.einsum("bvw,bwf->bvf", g, h)
        h = sum(jnp.where(deg == dv, 1.0, 0.0)[..., None]
                * (mh @ wh[:, i * od:(i + 1) * od] + me @ we[:, i * od:(i + 1) * od])
                for i, dv in enumerate(params["degrees"]))
        hs.append(h)
    pooled = 0.0
    for h_l, w_l in zip(hs, params["readout_w"]):
        aux = h_l @ w_l
        msk = (jnp.sum(jnp.where(aux != 0, 1.0, 0.0), -1, keepdims=True) > 0).astype(jnp.float32)
        pooled = pooled + jnp.sum(jax.nn.softmax(aux, axis=-1) * msk, axis=1)
    x = pooled
    for i, (w, b) in enumerate(params["nnet"]):
        x = x @ w + b
        if i < 3:
            x = jax.nn.relu(x)
    return x


if __name__ == "__main__":
    key = jax.random.PRNGKey(0)
    B, N = 2, 8            # batch, nodes per graph
    F_in, E = 4, 3         # node feature size, edge feature size (in_n = [F_in, E])
    out_update = [16, 16]  # two message-passing layers
    hidden_readout = 32
    l_target = 5
    d = list(range(1, N + 1))   # allowed node degrees

    k_g, k_h, k_e, k_p = jax.random.split(key, 4)
    g = (jax.random.uniform(k_g, (B, N, N)) > 0.5).astype(jnp.float32)
    h_in = jax.random.normal(k_h, (B, N, F_in), dtype=jnp.float32)
    e = jax.random.normal(k_e, (B, N, N, E), dtype=jnp.float32)

    params = init_m2m_params(k_p, d, (F_in, E), out_update, hidden_readout, l_target)

    # --- f32 matmul-operand path: exact math end-to-end, tight-ish check ---
    out_f32 = jax.block_until_ready(
        m2m_forward(params, g, h_in, e, compute_dtype=jnp.float32))
    ref = jax.block_until_ready(m2m_reference(params, g, h_in, e))
    assert out_f32.shape == (B, l_target), out_f32.shape
    err = float(jnp.max(jnp.abs(out_f32 - ref)))
    assert err < 5e-2, f"f32 path mismatch: {err}"

    # --- default (bf16 matmul operands, f32 elementwise) run ---
    out = jax.block_until_ready(m2m_forward(params, g, h_in, e, out_type="regression"))
    assert out.shape == (B, l_target), out.shape
    assert bool(jnp.all(jnp.isfinite(out)))
    print("KERNEL_OK")
</pallas_src>

<mosaic_0001>
module attributes {stable_mosaic.version = 11 : i64} {
  func.func @_m2m_fused_kernel(%arg0: i32, %arg1: memref<1x8x8xf32, #tpu.memory_space<vmem>>, %arg2: memref<1x8x4xf32, #tpu.memory_space<vmem>>, %arg3: memref<4x128xf32, #tpu.memory_space<vmem>>, %arg4: memref<1x8x128xf32, #tpu.memory_space<vmem>>, %arg5: memref<1x128xf32, #tpu.memory_space<vmem>>, %arg6: memref<128x16xf32, #tpu.memory_space<vmem>>, %arg7: memref<16x128xf32, #tpu.memory_space<vmem>>, %arg8: memref<1x8x128xf32, #tpu.memory_space<vmem>>, %arg9: memref<1x128xf32, #tpu.memory_space<vmem>>, %arg10: memref<128x16xf32, #tpu.memory_space<vmem>>, %arg11: memref<4x32xf32, #tpu.memory_space<vmem>>, %arg12: memref<16x32xf32, #tpu.memory_space<vmem>>, %arg13: memref<16x32xf32, #tpu.memory_space<vmem>>, %arg14: memref<32x128xf32, #tpu.memory_space<vmem>>, %arg15: memref<1x128xf32, #tpu.memory_space<vmem>>, %arg16: memref<128x256xf32, #tpu.memory_space<vmem>>, %arg17: memref<1x256xf32, #tpu.memory_space<vmem>>, %arg18: memref<256x128xf32, #tpu.memory_space<vmem>>, %arg19: memref<1x128xf32, #tpu.memory_space<vmem>>, %arg20: memref<128x5xf32, #tpu.memory_space<vmem>>, %arg21: memref<1x5xf32, #tpu.memory_space<vmem>>, %arg22: memref<1x1x5xf32, #tpu.memory_space<vmem>>) attributes {dimension_semantics = [#tpu.dimension_semantics<parallel>], iteration_bounds = array<i64: 2>, scalar_prefetch = 0 : i64, scratch_operands = 0 : i64, tpu.core_type = #tpu.core_type<tc>, window_params = [{transform_indices = @transform_0, window_bounds = array<i64: 1, 8, 8>}, {transform_indices = @transform_1, window_bounds = array<i64: 1, 8, 4>}, {pipeline_mode = #tpu.pipeline_mode<synchronous>, transform_indices = @transform_2, window_bounds = array<i64: 4, 128>}, {transform_indices = @transform_3, window_bounds = array<i64: 1, 8, 128>}, {pipeline_mode = #tpu.pipeline_mode<synchronous>, transform_indices = @transform_4, window_bounds = array<i64: 1, 128>}, {pipeline_mode = #tpu.pipeline_mode<synchronous>, transform_indices = @transform_5, window_bounds = array<i64: 128, 16>}, {pipeline_mode = #tpu.pipeline_mode<synchronous>, transform_indices = @transform_6, window_bounds = array<i64: 16, 128>}, {transform_indices = @transform_7, window_bounds = array<i64: 1, 8, 128>}, {pipeline_mode = #tpu.pipeline_mode<synchronous>, transform_indices = @transform_8, window_bounds = array<i64: 1, 128>}, {pipeline_mode = #tpu.pipeline_mode<synchronous>, transform_indices = @transform_9, window_bounds = array<i64: 128, 16>}, {pipeline_mode = #tpu.pipeline_mode<synchronous>, transform_indices = @transform_10, window_bounds = array<i64: 4, 32>}, {pipeline_mode = #tpu.pipeline_mode<synchronous>, transform_indices = @transform_11, window_bounds = array<i64: 16, 32>}, {pipeline_mode = #tpu.pipeline_mode<synchronous>, transform_indices = @transform_12, window_bounds = array<i64: 16, 32>}, {pipeline_mode = #tpu.pipeline_mode<synchronous>, transform_indices = @transform_13, window_bounds = array<i64: 32, 128>}, {pipeline_mode = #tpu.pipeline_mode<synchronous>, transform_indices = @transform_14, window_bounds = array<i64: 1, 128>}, {pipeline_mode = #tpu.pipeline_mode<synchronous>, transform_indices = @transform_15, window_bounds = array<i64: 128, 256>}, {pipeline_mode = #tpu.pipeline_mode<synchronous>, transform_indices = @transform_16, window_bounds = array<i64: 1, 256>}, {pipeline_mode = #tpu.pipeline_mode<synchronous>, transform_indices = @transform_17, window_bounds = array<i64: 256, 128>}, {pipeline_mode = #tpu.pipeline_mode<synchronous>, transform_indices = @transform_18, window_bounds = array<i64: 1, 128>}, {pipeline_mode = #tpu.pipeline_mode<synchronous>, transform_indices = @transform_19, window_bounds = array<i64: 128, 5>}, {pipeline_mode = #tpu.pipeline_mode<synchronous>, transform_indices = @transform_20, window_bounds = array<i64: 1, 5>}, {transform_indices = @transform_21, window_bounds = array<i64: 1, 1, 5>}]} {
    %c0 = arith.constant 0 : index
    %c0_0 = arith.constant 0 : index
    %0 = vector.load %arg14[%c0, %c0_0] : memref<32x128xf32, #tpu.memory_space<vmem>>, vector<32x128xf32>
    %c0_1 = arith.constant 0 : index
    %c0_2 = arith.constant 0 : index
    %1 = vector.load %arg15[%c0_1, %c0_2] : memref<1x128xf32, #tpu.memory_space<vmem>>, vector<1x128xf32>
    %c0_3 = arith.constant 0 : index
    %c0_4 = arith.constant 0 : index
    %2 = vector.load %arg16[%c0_3, %c0_4] : memref<128x256xf32, #tpu.memory_space<vmem>>, vector<128x256xf32>
    %c0_5 = arith.constant 0 : index
    %c0_6 = arith.constant 0 : index
    %3 = vector.load %arg17[%c0_5, %c0_6] : memref<1x256xf32, #tpu.memory_space<vmem>>, vector<1x256xf32>
    %c0_7 = arith.constant 0 : index
    %c0_8 = arith.constant 0 : index
    %4 = vector.load %arg18[%c0_7, %c0_8] : memref<256x128xf32, #tpu.memory_space<vmem>>, vector<256x128xf32>
    %c0_9 = arith.constant 0 : index
    %c0_10 = arith.constant 0 : index
    %5 = vector.load %arg19[%c0_9, %c0_10] : memref<1x128xf32, #tpu.memory_space<vmem>>, vector<1x128xf32>
    %c0_11 = arith.constant 0 : index
    %c0_12 = arith.constant 0 : index
    %6 = vector.load %arg20[%c0_11, %c0_12] : memref<128x5xf32, #tpu.memory_space<vmem>>, vector<128x5xf32>
    %c0_13 = arith.constant 0 : index
    %c0_14 = arith.constant 0 : index
    %7 = vector.load %arg21[%c0_13, %c0_14] : memref<1x5xf32, #tpu.memory_space<vmem>>, vector<1x5xf32>
    %c0_15 = arith.constant 0 : index
    %c0_16 = arith.constant 0 : index
    %c0_17 = arith.constant 0 : index
    %8 = vector.load %arg1[%c0_15, %c0_16, %c0_17] : memref<1x8x8xf32, #tpu.memory_space<vmem>>, vector<1x8x8xf32>
    %cst = arith.constant dense<0.000000e+00> : vector<1x8xf32>
    %9 = vector.multi_reduction <add>, %8, %cst [2] : vector<1x8x8xf32> to vector<1x8xf32>
    %10 = vector.shape_cast %9 : vector<1x8xf32> to vector<1x8x1xf32>
    %11 = vector.shape_cast %10 : vector<1x8x1xf32> to vector<8x1xf32>
    %c0_18 = arith.constant 0 : index
    %c0_19 = arith.constant 0 : index
    %c0_20 = arith.constant 0 : index
    %12 = vector.load %arg2[%c0_18, %c0_19, %c0_20] : memref<1x8x4xf32, #tpu.memory_space<vmem>>, vector<1x8x4xf32>
    %13 = vector.shape_cast %12 : vector<1x8x4xf32> to vector<8x4xf32>
    %c0_21 = arith.constant 0 : index
    %c0_22 = arith.constant 0 : index
    %14 = vector.load %arg11[%c0_21, %c0_22] : memref<4x32xf32, #tpu.memory_space<vmem>>, vector<4x32xf32>
    %cst_23 = arith.constant dense<0.000000e+00> : vector<8x32xf32>
    %15 = tpu.matmul %13, %14, %cst_23 {dimension_numbers = #tpu.dot_dimension_numbers<[1], [0], [0], [1], [0, 0, 1, 1], [], []>} : vector<8x4xf32>, vector<4x32xf32>, vector<8x32xf32> -> vector<8x32xf32>
    %cst_24 = arith.constant 0.000000e+00 : f32
    %16 = vector.broadcast %cst_24 : f32 to vector<8x32xf32>
    %17 = arith.cmpf one, %15, %16 : vector<8x32xf32>
    %cst_25 = arith.constant 1.000000e+00 : f32
    %cst_26 = arith.constant 0.000000e+00 : f32
    %18 = vector.broadcast %cst_25 : f32 to vector<8x32xf32>
    %19 = vector.broadcast %cst_26 : f32 to vector<8x32xf32>
    %20 = arith.select %17, %18, %19 : vector<8x32xi1>, vector<8x32xf32>
    %cst_27 = arith.constant dense<0xFF800000> : vector<8xf32>
    %21 = vector.multi_reduction <maximumf>, %20, %cst_27 [1] : vector<8x32xf32> to vector<8xf32>
    %cst_28 = arith.constant 0.000000e+00 : f32
    %22 = vector.broadcast %cst_28 : f32 to vector<8xf32>
    %23 = arith.cmpf ogt, %21, %22 : vector<8xf32>
    %24 = vector.shape_cast %23 : vector<8xi1> to vector<8x1xi1>
    %cst_29 = arith.constant dense<0xFF800000> : vector<8xf32>
    %25 = vector.multi_reduction <maximumf>, %15, %cst_29 [1] : vector<8x32xf32> to vector<8xf32>
    %26 = vector.shape_cast %25 : vector<8xf32> to vector<8x1xf32>
    %27 = vector.broadcast %26 : vector<8x1xf32> to vector<8x32xf32>
    %28 = arith.subf %15, %27 : vector<8x32xf32>
    %29 = math.exp %28 : vector<8x32xf32>
    %cst_30 = arith.constant dense<0.000000e+00> : vector<8xf32>
    %30 = vector.multi_reduction <add>, %29, %cst_30 [1] : vector<8x32xf32> to vector<8xf32>
    %31 = vector.shape_cast %30 : vector<8xf32> to vector<8x1xf32>
    %32 = vector.broadcast %31 : vector<8x1xf32> to vector<8x32xf32>
    %33 = arith.divf %29, %32 : vector<8x32xf32>
    %cst_31 = arith.constant 0.000000e+00 : f32
    %34 = vector.shape_cast %24 : vector<8x1xi1> to vector<8x1xi1>
    %35 = vector.broadcast %34 : vector<8x1xi1> to vector<8x32xi1>
    %36 = vector.broadcast %cst_31 : f32 to vector<8x32xf32>
    %37 = arith.select %35, %33, %36 : vector<8x32xi1>, vector<8x32xf32>
    %38 = vector.shape_cast %37 : vector<8x32xf32> to vector<1x8x32xf32>
    %cst_32 = arith.constant dense<0.000000e+00> : vector<1x32xf32>
    %39 = vector.multi_reduction <add>, %38, %cst_32 [1] : vector<1x8x32xf32> to vector<1x32xf32>
    %40 = vector.shape_cast %8 : vector<1x8x8xf32> to vector<1x8x8x1xf32>
    %41 = vector.shape_cast %12 : vector<1x8x4xf32> to vector<1x1x8x4xf32>
    %42 = vector.broadcast %40 : vector<1x8x8x1xf32> to vector<1x8x8x4xf32>
    %43 = vector.broadcast %41 : vector<1x1x8x4xf32> to vector<1x8x8x4xf32>
    %44 = arith.mulf %42, %43 : vector<1x8x8x4xf32>
    %cst_33 = arith.constant dense<0.000000e+00> : vector<1x8x4xf32>
    %45 = vector.multi_reduction <add>, %44, %cst_33 [2] : vector<1x8x8x4xf32> to vector<1x8x4xf32>
    %46 = vector.shape_cast %45 : vector<1x8x4xf32> to vector<8x4xf32>
    %c0_34 = arith.constant 0 : index
    %c0_35 = arith.constant 0 : index
    %47 = vector.load %arg3[%c0_34, %c0_35] : memref<4x128xf32, #tpu.memory_space<vmem>>, vector<4x128xf32>
    %cst_36 = arith.constant dense<0.000000e+00> : vector<8x128xf32>
    %48 = tpu.matmul %46, %47, %cst_36 {dimension_numbers = #tpu.dot_dimension_numbers<[1], [0], [0], [1], [0, 0, 1, 1], [], []>} : vector<8x4xf32>, vector<4x128xf32>, vector<8x128xf32> -> vector<8x128xf32>
    %c0_37 = arith.constant 0 : index
    %c0_38 = arith.constant 0 : index
    %c0_39 = arith.constant 0 : index
    %49 = vector.load %arg4[%c0_37, %c0_38, %c0_39] : memref<1x8x128xf32, #tpu.memory_space<vmem>>, vector<1x8x128xf32>
    %50 = vector.shape_cast %49 : vector<1x8x128xf32> to vector<8x128xf32>
    %51 = arith.addf %48, %50 : vector<8x128xf32>
    %c0_40 = arith.constant 0 : index
    %c0_41 = arith.constant 0 : index
    %52 = vector.load %arg5[%c0_40, %c0_41] : memref<1x128xf32, #tpu.memory_space<vmem>>, vector<1x128xf32>
    %53 = vector.broadcast %11 : vector<8x1xf32> to vector<8x128xf32>
    %54 = vector.broadcast %52 : vector<1x128xf32> to vector<8x128xf32>
    %55 = arith.cmpf oeq, %53, %54 : vector<8x128xf32>
    %cst_42 = arith.constant 0.000000e+00 : f32
    %56 = vector.broadcast %cst_42 : f32 to vector<8x128xf32>
    %57 = arith.select %55, %51, %56 : vector<8x128xi1>, vector<8x128xf32>
    %c0_43 = arith.constant 0 : index
    %c0_44 = arith.constant 0 : index
    %58 = vector.load %arg6[%c0_43, %c0_44] : memref<128x16xf32, #tpu.memory_space<vmem>>, vector<128x16xf32>
    %cst_45 = arith.constant dense<0.000000e+00> : vector<8x16xf32>
    %59 = tpu.matmul %57, %58, %cst_45 {dimension_numbers = #tpu.dot_dimension_numbers<[1], [0], [0], [1], [0, 0, 1, 1], [], []>} : vector<8x128xf32>, vector<128x16xf32>, vector<8x16xf32> -> vector<8x16xf32>
    %60 = vector.shape_cast %59 : vector<8x16xf32> to vector<1x8x16xf32>
    %c0_46 = arith.constant 0 : index
    %c0_47 = arith.constant 0 : index
    %61 = vector.load %arg12[%c0_46, %c0_47] : memref<16x32xf32, #tpu.memory_space<vmem>>, vector<16x32xf32>
    %cst_48 = arith.constant dense<0.000000e+00> : vector<8x32xf32>
    %62 = tpu.matmul %59, %61, %cst_48 {dimension_numbers = #tpu.dot_dimension_numbers<[1], [0], [0], [1], [0, 0, 1, 1], [], []>} : vector<8x16xf32>, vector<16x32xf32>, vector<8x32xf32> -> vector<8x32xf32>
    %cst_49 = arith.constant 0.000000e+00 : f32
    %63 = vector.broadcast %cst_49 : f32 to vector<8x32xf32>
    %64 = arith.cmpf one, %62, %63 : vector<8x32xf32>
    %cst_50 = arith.constant 1.000000e+00 : f32
    %cst_51 = arith.constant 0.000000e+00 : f32
    %65 = vector.broadcast %cst_50 : f32 to vector<8x32xf32>
    %66 = vector.broadcast %cst_51 : f32 to vector<8x32xf32>
    %67 = arith.select %64, %65, %66 : vector<8x32xi1>, vector<8x32xf32>
    %cst_52 = arith.constant dense<0xFF800000> : vector<8xf32>
    %68 = vector.multi_reduction <maximumf>, %67, %cst_52 [1] : vector<8x32xf32> to vector<8xf32>
    %cst_53 = arith.constant 0.000000e+00 : f32
    %69 = vector.broadcast %cst_53 : f32 to vector<8xf32>
    %70 = arith.cmpf ogt, %68, %69 : vector<8xf32>
    %71 = vector.shape_cast %70 : vector<8xi1> to vector<8x1xi1>
    %cst_54 = arith.constant dense<0xFF800000> : vector<8xf32>
    %72 = vector.multi_reduction <maximumf>, %62, %cst_54 [1] : vector<8x32xf32> to vector<8xf32>
    %73 = vector.shape_cast %72 : vector<8xf32> to vector<8x1xf32>
    %74 = vector.broadcast %73 : vector<8x1xf32> to vector<8x32xf32>
    %75 = arith.subf %62, %74 : vector<8x32xf32>
    %76 = math.exp %75 : vector<8x32xf32>
    %cst_55 = arith.constant dense<0.000000e+00> : vector<8xf32>
    %77 = vector.multi_reduction <add>, %76, %cst_55 [1] : vector<8x32xf32> to vector<8xf32>
    %78 = vector.shape_cast %77 : vector<8xf32> to vector<8x1xf32>
    %79 = vector.broadcast %78 : vector<8x1xf32> to vector<8x32xf32>
    %80 = arith.divf %76, %79 : vector<8x32xf32>
    %cst_56 = arith.constant 0.000000e+00 : f32
    %81 = vector.shape_cast %71 : vector<8x1xi1> to vector<8x1xi1>
    %82 = vector.broadcast %81 : vector<8x1xi1> to vector<8x32xi1>
    %83 = vector.broadcast %cst_56 : f32 to vector<8x32xf32>
    %84 = arith.select %82, %80, %83 : vector<8x32xi1>, vector<8x32xf32>
    %85 = vector.shape_cast %84 : vector<8x32xf32> to vector<1x8x32xf32>
    %cst_57 = arith.constant dense<0.000000e+00> : vector<1x32xf32>
    %86 = vector.multi_reduction <add>, %85, %cst_57 [1] : vector<1x8x32xf32> to vector<1x32xf32>
    %87 = arith.addf %39, %86 : vector<1x32xf32>
    %88 = vector.shape_cast %8 : vector<1x8x8xf32> to vector<1x8x8x1xf32>
    %89 = vector.shape_cast %60 : vector<1x8x16xf32> to vector<1x1x8x16xf32>
    %90 = vector.broadcast %88 : vector<1x8x8x1xf32> to vector<1x8x8x16xf32>
    %91 = vector.broadcast %89 : vector<1x1x8x16xf32> to vector<1x8x8x16xf32>
    %92 = arith.mulf %90, %91 : vector<1x8x8x16xf32>
    %cst_58 = arith.constant dense<0.000000e+00> : vector<1x8x16xf32>
    %93 = vector.multi_reduction <add>, %92, %cst_58 [2] : vector<1x8x8x16xf32> to vector<1x8x16xf32>
    %94 = vector.shape_cast %93 : vector<1x8x16xf32> to vector<8x16xf32>
    %c0_59 = arith.constant 0 : index
    %c0_60 = arith.constant 0 : index
    %95 = vector.load %arg7[%c0_59, %c0_60] : memref<16x128xf32, #tpu.memory_space<vmem>>, vector<16x128xf32>
    %cst_61 = arith.constant dense<0.000000e+00> : vector<8x128xf32>
    %96 = tpu.matmul %94, %95, %cst_61 {dimension_numbers = #tpu.dot_dimension_numbers<[1], [0], [0], [1], [0, 0, 1, 1], [], []>} : vector<8x16xf32>, vector<16x128xf32>, vector<8x128xf32> -> vector<8x128xf32>
    %c0_62 = arith.constant 0 : index
    %c0_63 = arith.constant 0 : index
    %c0_64 = arith.constant 0 : index
    %97 = vector.load %arg8[%c0_62, %c0_63, %c0_64] : memref<1x8x128xf32, #tpu.memory_space<vmem>>, vector<1x8x128xf32>
    %98 = vector.shape_cast %97 : vector<1x8x128xf32> to vector<8x128xf32>
    %99 = arith.addf %96, %98 : vector<8x128xf32>
    %c0_65 = arith.constant 0 : index
    %c0_66 = arith.constant 0 : index
    %100 = vector.load %arg9[%c0_65, %c0_66] : memref<1x128xf32, #tpu.memory_space<vmem>>, vector<1x128xf32>
    %101 = vector.broadcast %11 : vector<8x1xf32> to vector<8x128xf32>
    %102 = vector.broadcast %100 : vector<1x128xf32> to vector<8x128xf32>
    %103 = arith.cmpf oeq, %101, %102 : vector<8x128xf32>
    %cst_67 = arith.constant 0.000000e+00 : f32
    %104 = vector.broadcast %cst_67 : f32 to vector<8x128xf32>
    %105 = arith.select %103, %99, %104 : vector<8x128xi1>, vector<8x128xf32>
    %c0_68 = arith.constant 0 : index
    %c0_69 = arith.constant 0 : index
    %106 = vector.load %arg10[%c0_68, %c0_69] : memref<128x16xf32, #tpu.memory_space<vmem>>, vector<128x16xf32>
    %cst_70 = arith.constant dense<0.000000e+00> : vector<8x16xf32>
    %107 = tpu.matmul %105, %106, %cst_70 {dimension_numbers = #tpu.dot_dimension_numbers<[1], [0], [0], [1], [0, 0, 1, 1], [], []>} : vector<8x128xf32>, vector<128x16xf32>, vector<8x16xf32> -> vector<8x16xf32>
    %c0_71 = arith.constant 0 : index
    %c0_72 = arith.constant 0 : index
    %108 = vector.load %arg13[%c0_71, %c0_72] : memref<16x32xf32, #tpu.memory_space<vmem>>, vector<16x32xf32>
    %cst_73 = arith.constant dense<0.000000e+00> : vector<8x32xf32>
    %109 = tpu.matmul %107, %108, %cst_73 {dimension_numbers = #tpu.dot_dimension_numbers<[1], [0], [0], [1], [0, 0, 1, 1], [], []>} : vector<8x16xf32>, vector<16x32xf32>, vector<8x32xf32> -> vector<8x32xf32>
    %cst_74 = arith.constant 0.000000e+00 : f32
    %110 = vector.broadcast %cst_74 : f32 to vector<8x32xf32>
    %111 = arith.cmpf one, %109, %110 : vector<8x32xf32>
    %cst_75 = arith.constant 1.000000e+00 : f32
    %cst_76 = arith.constant 0.000000e+00 : f32
    %112 = vector.broadcast %cst_75 : f32 to vector<8x32xf32>
    %113 = vector.broadcast %cst_76 : f32 to vector<8x32xf32>
    %114 = arith.select %111, %112, %113 : vector<8x32xi1>, vector<8x32xf32>
    %cst_77 = arith.constant dense<0xFF800000> : vector<8xf32>
    %115 = vector.multi_reduction <maximumf>, %114, %cst_77 [1] : vector<8x32xf32> to vector<8xf32>
    %cst_78 = arith.constant 0.000000e+00 : f32
    %116 = vector.broadcast %cst_78 : f32 to vector<8xf32>
    %117 = arith.cmpf ogt, %115, %116 : vector<8xf32>
    %118 = vector.shape_cast %117 : vector<8xi1> to vector<8x1xi1>
    %cst_79 = arith.constant dense<0xFF800000> : vector<8xf32>
    %119 = vector.multi_reduction <maximumf>, %109, %cst_79 [1] : vector<8x32xf32> to vector<8xf32>
    %120 = vector.shape_cast %119 : vector<8xf32> to vector<8x1xf32>
    %121 = vector.broadcast %120 : vector<8x1xf32> to vector<8x32xf32>
    %122 = arith.subf %109, %121 : vector<8x32xf32>
    %123 = math.exp %122 : vector<8x32xf32>
    %cst_80 = arith.constant dense<0.000000e+00> : vector<8xf32>
    %124 = vector.multi_reduction <add>, %123, %cst_80 [1] : vector<8x32xf32> to vector<8xf32>
    %125 = vector.shape_cast %124 : vector<8xf32> to vector<8x1xf32>
    %126 = vector.broadcast %125 : vector<8x1xf32> to vector<8x32xf32>
    %127 = arith.divf %123, %126 : vector<8x32xf32>
    %cst_81 = arith.constant 0.000000e+00 : f32
    %128 = vector.shape_cast %118 : vector<8x1xi1> to vector<8x1xi1>
    %129 = vector.broadcast %128 : vector<8x1xi1> to vector<8x32xi1>
    %130 = vector.broadcast %cst_81 : f32 to vector<8x32xf32>
    %131 = arith.select %129, %127, %130 : vector<8x32xi1>, vector<8x32xf32>
    %132 = vector.shape_cast %131 : vector<8x32xf32> to vector<1x8x32xf32>
    %cst_82 = arith.constant dense<0.000000e+00> : vector<1x32xf32>
    %133 = vector.multi_reduction <add>, %132, %cst_82 [1] : vector<1x8x32xf32> to vector<1x32xf32>
    %134 = arith.addf %87, %133 : vector<1x32xf32>
    %cst_83 = arith.constant dense<0.000000e+00> : vector<1x128xf32>
    %135 = tpu.matmul %134, %0, %cst_83 {dimension_numbers = #tpu.dot_dimension_numbers<[1], [0], [0], [1], [0, 0, 1, 1], [], []>} : vector<1x32xf32>, vector<32x128xf32>, vector<1x128xf32> -> vector<1x128xf32>
    %136 = arith.addf %135, %1 : vector<1x128xf32>
    %cst_84 = arith.constant 0.000000e+00 : f32
    %137 = vector.broadcast %cst_84 : f32 to vector<1x128xf32>
    %138 = arith.maximumf %136, %137 : vector<1x128xf32>
    %cst_85 = arith.constant dense<0.000000e+00> : vector<1x256xf32>
    %139 = tpu.matmul %138, %2, %cst_85 {dimension_numbers = #tpu.dot_dimension_numbers<[1], [0], [0], [1], [0, 0, 1, 1], [], []>} : vector<1x128xf32>, vector<128x256xf32>, vector<1x256xf32> -> vector<1x256xf32>
    %140 = arith.addf %139, %3 : vector<1x256xf32>
    %cst_86 = arith.constant 0.000000e+00 : f32
    %141 = vector.broadcast %cst_86 : f32 to vector<1x256xf32>
    %142 = arith.maximumf %140, %141 : vector<1x256xf32>
    %cst_87 = arith.constant dense<0.000000e+00> : vector<1x128xf32>
    %143 = tpu.matmul %142, %4, %cst_87 {dimension_numbers = #tpu.dot_dimension_numbers<[1], [0], [0], [1], [0, 0, 1, 1], [], []>} : vector<1x256xf32>, vector<256x128xf32>, vector<1x128xf32> -> vector<1x128xf32>
    %144 = arith.addf %143, %5 : vector<1x128xf32>
    %cst_88 = arith.constant 0.000000e+00 : f32
    %145 = vector.broadcast %cst_88 : f32 to vector<1x128xf32>
    %146 = arith.maximumf %144, %145 : vector<1x128xf32>
    %cst_89 = arith.constant dense<0.000000e+00> : vector<1x5xf32>
    %147 = tpu.matmul %146, %6, %cst_89 {dimension_numbers = #tpu.dot_dimension_numbers<[1], [0], [0], [1], [0, 0, 1, 1], [], []>} : vector<1x128xf32>, vector<128x5xf32>, vector<1x5xf32> -> vector<1x5xf32>
    %148 = arith.addf %147, %7 : vector<1x5xf32>
    %149 = vector.shape_cast %148 : vector<1x5xf32> to vector<1x1x5xf32>
    %c0_90 = arith.constant 0 : index
    %c0_91 = arith.constant 0 : index
    %c0_92 = arith.constant 0 : index
    %150 = vector.load %arg22[%c0_90, %c0_91, %c0_92] : memref<1x1x5xf32, #tpu.memory_space<vmem>>, vector<1x1x5xf32>
    tpu.vector_store %arg22[%c0_90, %c0_91, %c0_92], %149 {strides = array<i32>} : memref<1x1x5xf32, #tpu.memory_space<vmem>>, vector<1x1x5xf32>,
    return
  }
  func.func @transform_0(%arg0: i32) -> (i32, i32, i32) {
    %c0_i32 = arith.constant 0 : i32
    %c0_i32_0 = arith.constant 0 : i32
    %c0_i32_1 = arith.constant 0 : i32
    return %arg0, %c0_i32, %c0_i32_0 : i32, i32, i32
  }
  func.func @transform_1(%arg0: i32) -> (i32, i32, i32) {
    %c0_i32 = arith.constant 0 : i32
    %c0_i32_0 = arith.constant 0 : i32
    %c0_i32_1 = arith.constant 0 : i32
    return %arg0, %c0_i32, %c0_i32_0 : i32, i32, i32
  }
  func.func @transform_2(%arg0: i32) -> (i32, i32) {
    %c0_i32 = arith.constant 0 : i32
    %c0_i32_0 = arith.constant 0 : i32
    %c0_i32_1 = arith.constant 0 : i32
    return %c0_i32, %c0_i32_0 : i32, i32
  }
  func.func @transform_3(%arg0: i32) -> (i32, i32, i32) {
    %c0_i32 = arith.constant 0 : i32
    %c0_i32_0 = arith.constant 0 : i32
    %c0_i32_1 = arith.constant 0 : i32
    return %arg0, %c0_i32, %c0_i32_0 : i32, i32, i32
  }
  func.func @transform_4(%arg0: i32) -> (i32, i32) {
    %c0_i32 = arith.constant 0 : i32
    %c0_i32_0 = arith.constant 0 : i32
    %c0_i32_1 = arith.constant 0 : i32
    return %c0_i32, %c0_i32_0 : i32, i32
  }
  func.func @transform_5(%arg0: i32) -> (i32, i32) {
    %c0_i32 = arith.constant 0 : i32
    %c0_i32_0 = arith.constant 0 : i32
    %c0_i32_1 = arith.constant 0 : i32
    return %c0_i32, %c0_i32_0 : i32, i32
  }
  func.func @transform_6(%arg0: i32) -> (i32, i32) {
    %c0_i32 = arith.constant 0 : i32
    %c0_i32_0 = arith.constant 0 : i32
    %c0_i32_1 = arith.constant 0 : i32
    return %c0_i32, %c0_i32_0 : i32, i32
  }
  func.func @transform_7(%arg0: i32) -> (i32, i32, i32) {
    %c0_i32 = arith.constant 0 : i32
    %c0_i32_0 = arith.constant 0 : i32
    %c0_i32_1 = arith.constant 0 : i32
    return %arg0, %c0_i32, %c0_i32_0 : i32, i32, i32
  }
  func.func @transform_8(%arg0: i32) -> (i32, i32) {
    %c0_i32 = arith.constant 0 : i32
    %c0_i32_0 = arith.constant 0 : i32
    %c0_i32_1 = arith.constant 0 : i32
    return %c0_i32, %c0_i32_0 : i32, i32
  }
  func.func @transform_9(%arg0: i32) -> (i32, i32) {
    %c0_i32 = arith.constant 0 : i32
    %c0_i32_0 = arith.constant 0 : i32
    %c0_i32_1 = arith.constant 0 : i32
    return %c0_i32, %c0_i32_0 : i32, i32
  }
  func.func @transform_10(%arg0: i32) -> (i32, i32) {
    %c0_i32 = arith.constant 0 : i32
    %c0_i32_0 = arith.constant 0 : i32
    %c0_i32_1 = arith.constant 0 : i32
    return %c0_i32, %c0_i32_0 : i32, i32
  }
  func.func @transform_11(%arg0: i32) -> (i32, i32) {
    %c0_i32 = arith.constant 0 : i32
    %c0_i32_0 = arith.constant 0 : i32
    %c0_i32_1 = arith.constant 0 : i32
    return %c0_i32, %c0_i32_0 : i32, i32
  }
  func.func @transform_12(%arg0: i32) -> (i32, i32) {
    %c0_i32 = arith.constant 0 : i32
    %c0_i32_0 = arith.constant 0 : i32
    %c0_i32_1 = arith.constant 0 : i32
    return %c0_i32, %c0_i32_0 : i32, i32
  }
  func.func @transform_13(%arg0: i32) -> (i32, i32) {
    %c0_i32 = arith.constant 0 : i32
    %c0_i32_0 = arith.constant 0 : i32
    %c0_i32_1 = arith.constant 0 : i32
    return %c0_i32, %c0_i32_0 : i32, i32
  }
  func.func @transform_14(%arg0: i32) -> (i32, i32) {
    %c0_i32 = arith.constant 0 : i32
    %c0_i32_0 = arith.constant 0 : i32
    %c0_i32_1 = arith.constant 0 : i32
    return %c0_i32, %c0_i32_0 : i32, i32
  }
  func.func @transform_15(%arg0: i32) -> (i32, i32) {
    %c0_i32 = arith.constant 0 : i32
    %c0_i32_0 = arith.constant 0 : i32
    %c0_i32_1 = arith.constant 0 : i32
    return %c0_i32, %c0_i32_0 : i32, i32
  }
  func.func @transform_16(%arg0: i32) -> (i32, i32) {
    %c0_i32 = arith.constant 0 : i32
    %c0_i32_0 = arith.constant 0 : i32
    %c0_i32_1 = arith.constant 0 : i32
    return %c0_i32, %c0_i32_0 : i32, i32
  }
  func.func @transform_17(%arg0: i32) -> (i32, i32) {
    %c0_i32 = arith.constant 0 : i32
    %c0_i32_0 = arith.constant 0 : i32
    %c0_i32_1 = arith.constant 0 : i32
    return %c0_i32, %c0_i32_0 : i32, i32
  }
  func.func @transform_18(%arg0: i32) -> (i32, i32) {
    %c0_i32 = arith.constant 0 : i32
    %c0_i32_0 = arith.constant 0 : i32
    %c0_i32_1 = arith.constant 0 : i32
    return %c0_i32, %c0_i32_0 : i32, i32
  }
  func.func @transform_19(%arg0: i32) -> (i32, i32) {
    %c0_i32 = arith.constant 0 : i32
    %c0_i32_0 = arith.constant 0 : i32
    %c0_i32_1 = arith.constant 0 : i32
    return %c0_i32, %c0_i32_0 : i32, i32
  }
  func.func @transform_20(%arg0: i32) -> (i32, i32) {
    %c0_i32 = arith.constant 0 : i32
    %c0_i32_0 = arith.constant 0 : i32
    %c0_i32_1 = arith.constant 0 : i32
    return %c0_i32, %c0_i32_0 : i32, i32
  }
  func.func @transform_21(%arg0: i32) -> (i32, i32, i32) {
    %c0_i32 = arith.constant 0 : i32
    %c0_i32_0 = arith.constant 0 : i32
    %c0_i32_1 = arith.constant 0 : i32
    return %arg0, %c0_i32, %c0_i32_0 : i32, i32, i32
  }
}

</mosaic_0001>

<bundles_post_ra>
// kernel: tpu_custom_call.1
= control target key start
LH: loop header
LB: loop body
LE: loop exit
PB: predicated region body
PF: predicated region fallthrough
CT: control target
= control target key end

     0   :  { %s3289_s0 = inlined_call_operand.vmem [shape: f32[2,8,8], index: 0, kind: input, shape index: {}]   ;;  %s3290_s1 = inlined_call_operand.vmem [shape: f32[2,8,4], index: 1, kind: input, shape index: {}]   ;;  %s3291_s2 = inlined_call_operand.vmem [shape: f32[4,128], index: 2, kind: input, shape index: {}]   ;;  %s3292_s3 = inlined_call_operand.vmem [shape: f32[2,8,128], index: 3, kind: input, shape index: {}]   ;;  %s3293_s4 = inlined_call_operand.vmem [shape: f32[1,128], index: 4, kind: input, shape index: {}]   ;;  %s3294_s5 = inlined_call_operand.vmem [shape: f32[128,16], index: 5, kind: input, shape index: {}]   ;;  %s3295_s6 = inlined_call_operand.vmem [shape: f32[16,128], index: 6, kind: input, shape index: {}]   ;;  %s3296_s7 = inlined_call_operand.vmem [shape: f32[2,8,128], index: 7, kind: input, shape index: {}]   ;;  %s3297_s8 = inlined_call_operand.vmem [shape: f32[1,128], index: 8, kind: input, shape index: {}]   ;;  %s3298_s9 = inlined_call_operand.vmem [shape: f32[128,16], index: 9, kind: input, shape index: {}]   ;;  %s3299_s10 = inlined_call_operand.vmem [shape: f32[4,32], index: 10, kind: input, shape index: {}]   ;;  %s3300_s11 = inlined_call_operand.vmem [shape: f32[16,32], index: 11, kind: input, shape index: {}]   ;;  %s3301_s12 = inlined_call_operand.vmem [shape: f32[16,32], index: 12, kind: input, shape index: {}]   ;;  %s3302_s13 = inlined_call_operand.vmem [shape: f32[32,128], index: 13, kind: input, shape index: {}]   ;;  %s3303_s14 = inlined_call_operand.vmem [shape: f32[1,128], index: 14, kind: input, shape index: {}]   ;;  %s3304_s15 = inlined_call_operand.vmem [shape: f32[128,256], index: 15, kind: input, shape index: {}]   ;;  %s3305_s16 = inlined_call_operand.vmem [shape: f32[1,256], index: 16, kind: input, shape index: {}]   ;;  %s3306_s17 = inlined_call_operand.hbm [shape: f32[256,128], index: 17, kind: input, shape index: {}]   ;;  %s3307_s18 = inlined_call_operand.vmem [shape: f32[1,128], index: 18, kind: input, shape index: {}]   ;;  %s3308_s19 = inlined_call_operand.vmem [shape: f32[128,5], index: 19, kind: input, shape index: {}]   ;;  %s3309_s20 = inlined_call_operand.vmem [shape: f32[1,5], index: 20, kind: input, shape index: {}]   ;;  %s3310_s21 = inlined_call_operand.hbm [shape: f32[2,1,5], index: 21, kind: output, shape index: {}]  }
   0x1   :  { %3316 = sst [smem:[#allocation12_spill]] %s3289_s0 }
   0x2   :  { %3317 = sst [smem:[#allocation13_spill]] %s3290_s1 }
   0x3   :  { %3318 = sst [smem:[#allocation14_spill]] %s3291_s2 }
   0x4   :  { %3319 = sst [smem:[#allocation15_spill]] %s3292_s3 }
   0x5   :  { %3320 = sst [smem:[#allocation16_spill]] %s3293_s4 }
   0x6   :  { %3321 = sst [smem:[#allocation17_spill]] %s3294_s5 }
   0x7   :  { %3322 = sst [smem:[#allocation18_spill]] %s3295_s6 }
   0x8   :  { %3323 = sst [smem:[#allocation19_spill]] %s3306_s17 }
   0x9   :  { %26 = vsyncpa [#allocation3], 0 }
   0xa   :  { %27 = vsyncpa [#allocation4], 0 }
   0xb   :  { %29 = vsyncpa [#allocation4 + $0x1], 0  ;;  %s2655_s2 = smov 0   ;;  %s2657_s25 = smov 0  }
   0xc   :  { %s2659_s26 = smov 0   ;;  %s2661_s27 = smov 0  }
   0xd LB: > { %3324 = sst [smem:[#allocation8_spill]] %s2533_s26  ;;  %s2676_s3 = sadd.s32 4294967295, %s2537_s27   ;;  %s2537_s27 = sphi %s2661_s27, %s3341_s27   ;;  %s2533_s26 = sphi %s2659_s26, %s3343_s26   ;;  %s2529_s25 = sphi %s2657_s25, %s3345_s25   ;;  %s2525_s2 = sphi %s2655_s2, %s3344_s2  }
   0xe   : > { %s2105_s28 = sadd.s32 4294967294, %s2537_s27   ;;  %s2680_s29 = sadd.s32 1, %s2537_s27  }
   0xf   : > { %3325 = sst [smem:[#allocation9_spill]] %s2680_s29  ;;  %s503_s0 = sadd.s32 1, %s2533_s26 }
  0x10   : > { %s500_s4 = ssub.s32 %s2537_s27, %s2680_s29  ;;  %p513_p0 = scmp.ne.s32.totalorder %s2533_s26, %s2529_s25 }
  0x11   : > { %p501_p1 = scmp.eq.s32.totalorder %s500_s4, 0  ;;  %p514_p2 = scmp.eq.s32.totalorder %s2676_s3, 1 }
  0x12   : > { %p519_p3 = scmp.ne.s32.totalorder %s2529_s25, %s2525_s2  ;;  %p520_p4 = scmp.eq.s32.totalorder %s2105_s28, 1 }
  0x13   : > { %s2691_s30 = scalar_select %p501_p1, %s2533_s26, %s503_s0  }
  0x14   : > { %p2693_p5 = por %p514_p2, %p513_p0  ;;  %p2697_p6 = por %p520_p4, %p519_p3 }
  0x15   : > { %3326 = sst [smem:[#allocation10_spill]] %s2691_s30  ;;  %p2106_p7 = scmp.ge.s32.totalorder %s2537_s27, 1 }
  0x16   : > { %s3328_s22 = scalar_select %p2697_p6, 1, 0 }
  0x17   : > { %p527_p8 = scmp.lt.s32.totalorder %s2537_s27, 3  ;;  %p2395_p9 = scmp.eq.s32.totalorder %s2676_s3, 0 }
  0x18   : > { %3329 = sst [smem:[#allocation11_spill]] %s3328_s22  ;;  %s2539_s1 = smov [#allocation2]  }
  0x19   : > { %p2704_p10 = pnand %p2106_p7, %p527_p8  ;;  %s578_s24 = sshll.u32 %s2539_s1, 4  ;;  %s579_s24 = int_to_ptr.vmem [resolvable:$true] %s578_s24 }
  0x1a   : > { %s2458_s28 = scalar_lea.vmem %s579_s24, 4096  ;;  %p2466_p3 = scmp.lt.s32.totalorder %s579_s24, %s579_s24 }
  0x1b   : > { %p2387_p11 = pneg %p2704_p10  ;;  %p2459_p0 = scmp.ne.s32.totalorder %s579_s24, %s2458_s28 }
  0x1c   : > { %p2467_p4 = scmp.lt.s32.totalorder %s2458_s28, %s2458_s28 }
  0x1d   : > { %p2388_p12 = pnand %p2395_p9, %p2387_p11 }
  0x1e   : > { %p2468_p6 = por %p2467_p4, %p2466_p3 }
  0x1f   : > { %p2449_p13 = pneg %p2388_p12 }
  0x21   : > { %p2461_p1 = pnand %p2459_p0, %p2449_p13 }
  0x23   : > { %p2462_p2 = pneg %p2461_p1 }
  0x25   : > { %p2469_p7 = pnand %p2468_p6, %p2462_p2 }
  0x27   : > { %2472 = shalt.err (!%p2469_p7)
}
  0x28   : > { %s2540_s0 = smov 128   ;;  %s2541_s4 = smov 8  }
  0x29   : > { %s3331_s17 = sld [smem:[#allocation19_spill]] }
  0x2b   : > { %631 = sbr.rel (%p2704_p10) target bundleno = 2331 (0x91b), region = 104 }
  0x2f   : > { %2390 = dma.hbm_to_vmem [thread:$0]  (!%p2388_p12), %s3331_s17, 4096, %s579_s24, [#allocation3], %s2540_s0, %s2540_s0, %s2541_s4  }
  0x30   : > { %2516 = dma.done.wait (%p2395_p9), [#allocation3], 4096  }
  0x31   : > { %2518 = vsyncadd (%p2395_p9), [#allocation3], 4294963200  ;;  %p701_p8 = scmp.lt.s32.totalorder %s2676_s3, 1  ;;  %v918_v0 = vlaneseq  ;;  %v2542_v1 = vmov 0.0   ;;  %vm2543_vm0 = vmmov 0   ;;  %vm816_vm1 = vcmask 1043456  }
  0x32   : > { %2234 = vmatprep.subr.mxu0 %v2542_v1  ;;  %2236 = vmatprep.mubr.msk.f32.mxu0 %vm2543_vm0, %v2542_v1  ;;  %s3332_s24 = sld [smem:[#allocation13_spill]]  ;;  %vm812_vm2 = vcmask 31744   ;;  %v811_v7 = vld [vmem:[%s3299_s10] sm:$0xf]  ;;  %vm806_vm3 = vcmask 64512   ;;  %vm1048_vm4 = vcmask 1041409  }
  0x33   : > { %s702_s26 = scalar_select %p701_p8, %s2676_s3, 1  ;;  %v2726_v2 = vshrl.u32 %v918_v0, 7  ;;  %2293 = vmatprep.subr.mxu1 %v2542_v1  ;;  %2325 = vmatprep.mubr.msk.f32.mxu1 %vm2543_vm0, %v2542_v1  ;;  %vm1050_vm5 = vcmask 1042434   ;;  %vm1052_vm6 = vcmask 1043459   ;;  %vm1054_vm7 = vcmask 1044484  }
  0x34   : > { %s3333_s17 = sld [smem:[#allocation12_spill]]  ;;  %2235 = vmatpush3.msk.msra.mxu0 %vm816_vm1, %v811_v7  ;;  %vm1056_vm8 = vcmask 1045509   ;;  %vm1058_vm9 = vcmask 1046534   ;;  %vm1060_vm10 = vcmask 1047559   ;;  %vm892_vm11 = vcmask 261120   ;;  %s2127_s23 = sshll.u32 %s2676_s3, 4 }
  0x35   : > { %s2731_s30 = sshll.u32 %s702_s26, 3  ;;  %v934_v3 = vsub.s32 2, %v2726_v2  ;;  %v920_v4 = vsub.s32 0, %v2726_v2  ;;  %v941_v5 = vsub.s32 3, %v2726_v2  ;;  %v927_v6 = vsub.s32 1, %v2726_v2  ;;  %2239 = vmatprep.subr.mxu0 %v2542_v1  ;;  %s3334_s22 = sld [smem:[#allocation14_spill]] }
  0x36   : > { %v955_v14 = vsub.s32 5, %v2726_v2  ;;  %v948_v15 = vsub.s32 4, %v2726_v2  ;;  %v969_v18 = vsub.s32 7, %v2726_v2  ;;  %v962_v19 = vsub.s32 6, %v2726_v2  ;;  %s3338_s6 = sld [smem:[#allocation18_spill]]  ;;  %s716_s4 = scalar_lea.vmem %s3296_s7, %s2731_s30  ;;  %v791_v2 = vld [vmem:[%s3308_s19 + $0x18] sm:$0xff] }
  0x37   : > { %vm1234_vm13 = vcmask 130048   ;;  %s3254_s26 = scalar_lea.hbm %s3310_s21, %s2127_s23  ;;  %s2544_s3 = smov [#allocation5]  }
  0x38   : > { %s708_s28 = scalar_lea.vmem %s3332_s24, %s2731_s30  ;;  %s3335_s24 = sld [smem:[#allocation17_spill]] }
  0x39   : > { %v2748_v8 = vld [vmem:[%s708_s28] sm:$0xff]  ;;  %s3337_s28 = sld [smem:[#allocation16_spill]] }
  0x3a   : > { %s704_s29 = scalar_lea.vmem %s3333_s17, %s2731_s30  ;;  %2237 = vmatmul.mubr.msk.f32.vlgmr.msra.gmra.mxu0 %vm812_vm2, %v2748_v8 }
  0x3b   : > { %v805_v9 = vld [vmem:[%s704_s29] sm:$0xff]  ;;  %2241 = vmatprep.mubr.msk.f32.mxu0 %vm2543_vm0, %v2542_v1  ;;  %s3336_s29 = sld [smem:[#allocation15_spill]] }
  0x3c   : > { %v935_v10 = vrot.slane %v805_v9, %v934_v3  ;;  %v921_v11 = vrot.slane %v805_v9, %v920_v4  ;;  %v942_v12 = vrot.slane %v805_v9, %v941_v5  ;;  %v928_v13 = vrot.slane %v805_v9, %v927_v6  ;;  %v1038_v22 = vld [vmem:[%s3334_s22] sm:$0xf] }
  0x3d   : > { %v956_v16 = vrot.slane %v805_v9, %v955_v14  ;;  %v949_v17 = vrot.slane %v805_v9, %v948_v15  ;;  %v970_v20 = vrot.slane %v805_v9, %v969_v18  ;;  %v963_v21 = vrot.slane %v805_v9, %v962_v19  ;;  %2240 = vmatpush3.msk.msra.mxu0 %vm816_vm1, %v1038_v22 }
  0x3e   : > { %937 = vbcast.lane.b32.xlu1 %v935_v10, 256  ;;  %923 = vbcast.lane.b32.xlu0 %v921_v11, 256  ;;  %v807_v23 = vsel %vm806_vm3, %v805_v9, 0.0 }
  0x3f   : > { %2244 = vmatprep.subr.mxu0 %v2542_v1 }
  0x41   : > { %s712_s22 = scalar_lea.vmem %s3336_s29, %s2731_s30  ;;  %s699_s30 = sand.u32 1, %s2529_s25  }
  0x42   : > { %944 = vbcast.lane.b32.xlu1 %v942_v12, 256  ;;  %930 = vbcast.lane.b32.xlu0 %v928_v13, 256  ;;  %s700_s1 = scalar_lea.vmem [#allocation5], %s699_s30  ;;  %s1990_s17 = scalar_lea.sflag [#allocation4], %s699_s30 }
  0x43   : > { %s2477_s29 = sshll.u32 %s2544_s3, 4  ;;  %s2478_s29 = int_to_ptr.vmem [resolvable:$false] %s2477_s29 }
  0x46   : > { %958 = vbcast.lane.b32.xlu1 %v956_v16, 256  ;;  %951 = vbcast.lane.b32.xlu0 %v949_v17, 256 }
  0x4a   : > { %972 = vbcast.lane.b32.xlu1 %v970_v20, 256  ;;  %965 = vbcast.lane.b32.xlu0 %v963_v21, 256 }
  0x69   : > { %808 = vadd.xlane.f32.xlu0 %v807_v23 }
  0xb0   : > { %v2769_v24 = vpop.permute.xlu1 %937  ;;  %v2771_v25 = vpop.permute.xlu0 %923 }
  0xb1   : > { %v976_v26 = vmul.f32 %v2769_v24, %v2748_v8  ;;  %v974_v27 = vmul.f32 %v2771_v25, %v2748_v8 }
  0xb3   : > { %v996_v28 = vsel %vm812_vm2, %v976_v26, 0.0  ;;  %v982_v29 = vsel %vm812_vm2, %v974_v27, 0.0 }
  0xb4   : > { %v997_v30 = vrot.slane %v996_v28, 4  ;;  %v983_v31 = vrot.slane %v982_v29, 4  ;;  %v2779_v32 = vpop.permute.xlu1 %944  ;;  %v2781_v33 = vpop.permute.xlu0 %930 }
  0xb5   : > { %v977_v34 = vmul.f32 %v2779_v32, %v2748_v8  ;;  %v975_v35 = vmul.f32 %v2781_v33, %v2748_v8 }
  0xb6   : > { %v998_v36 = vadd.f32 %v997_v30, %v996_v28  ;;  %v984_v37 = vadd.f32 %v983_v31, %v982_v29 }
  0xb7   : > { %v1003_v38 = vsel %vm812_vm2, %v977_v34, 0.0  ;;  %v989_v39 = vsel %vm812_vm2, %v975_v35, 0.0 }
  0xb8   : > { %v999_v40 = vrot.slane %v998_v36, 2  ;;  %v985_v41 = vrot.slane %v984_v37, 2  ;;  %v1004_v42 = vrot.slane %v1003_v38, 4  ;;  %v990_v43 = vrot.slane %v989_v39, 4  ;;  %v2789_v44 = vpop.permute.xlu1 %958  ;;  %v2791_v45 = vpop.permute.xlu0 %951 }
  0xb9   : > { %v979_v46 = vmul.f32 %v2789_v44, %v2748_v8  ;;  %v978_v47 = vmul.f32 %v2791_v45, %v2748_v8 }
  0xba   : > { %v1000_v48 = vadd.f32 %v999_v40, %v998_v36  ;;  %v986_v49 = vadd.f32 %v985_v41, %v984_v37  ;;  %v1005_v50 = vadd.f32 %v1004_v42, %v1003_v38  ;;  %v991_v51 = vadd.f32 %v990_v43, %v989_v39 }
  0xbb   : > { %v1017_v52 = vsel %vm812_vm2, %v979_v46, 0.0  ;;  %v1010_v53 = vsel %vm812_vm2, %v978_v47, 0.0 }
  0xbc   : > { %v1006_v54 = vrot.slane %v1005_v50, 2  ;;  %v992_v55 = vrot.slane %v991_v51, 2  ;;  %v2799_v56 = vpop.permute.xlu1 %972  ;;  %v2801_v57 = vpop.permute.xlu0 %965  ;;  %v1018_v58 = vrot.slane %v1017_v52, 4  ;;  %v1011_v59 = vrot.slane %v1010_v53, 4 }
  0xbd   : > { %v981_v60 = vmul.f32 %v2799_v56, %v2748_v8  ;;  %v980_v61 = vmul.f32 %v2801_v57, %v2748_v8  ;;  %v1001_v62 = vrot.slane %v1000_v48, 1  ;;  %v987_v63 = vrot.slane %v986_v49, 1 }
  0xbe   : > { %v1007_v0 = vadd.f32 %v1006_v54, %v1005_v50  ;;  %v993_v3 = vadd.f32 %v992_v55, %v991_v51  ;;  %v1019_v5 = vadd.f32 %v1018_v58, %v1017_v52  ;;  %v1012_v7 = vadd.f32 %v1011_v59, %v1010_v53  ;;  %v1160_v50 = vld [vmem:[%s3335_s24 + $0x70] sm:$0xff]  ;;  %v1159_v51 = vld [vmem:[%s3335_s24 + $0x68] sm:$0xff]  ;;  %v1158_v52 = vld [vmem:[%s3335_s24 + $0x60] sm:$0xff] }
  0xbf   : > { %v1031_v9 = vsel %vm812_vm2, %v981_v60, 0.0  ;;  %v1024_v10 = vsel %vm812_vm2, %v980_v61, 0.0  ;;  %v988_v17 = vadd.f32 %v987_v63, %v986_v49  ;;  %v1002_v20 = vadd.f32 %v1001_v62, %v1000_v48  ;;  %v1161_v48 = vld [vmem:[%s3335_s24 + $0x78] sm:$0xff]  ;;  %v1156_v54 = vld [vmem:[%s3335_s24 + $0x50] sm:$0xff]  ;;  %v1155_v55 = vld [vmem:[%s3335_s24 + $0x48] sm:$0xff] }
  0xc0   : > { %v1008_v11 = vrot.slane %v1007_v0, 1  ;;  %v994_v12 = vrot.slane %v993_v3, 1  ;;  %v1032_v13 = vrot.slane %v1031_v9, 4  ;;  %v1025_v14 = vrot.slane %v1024_v10, 4  ;;  %v1157_v53 = vld [vmem:[%s3335_s24 + $0x58] sm:$0xff]  ;;  %v1154_v58 = vld [vmem:[%s3335_s24 + $0x40] sm:$0xff] }
  0xc1   : > { %v1020_v15 = vrot.slane %v1019_v5, 2  ;;  %v1013_v16 = vrot.slane %v1012_v7, 2  ;;  %v1153_v59 = vld [vmem:[%s3335_s24 + $0x38] sm:$0xff]  ;;  %v1152_v60 = vld [vmem:[%s3335_s24 + $0x30] sm:$0xff]  ;;  %v1151_v61 = vld [vmem:[%s3335_s24 + $0x28] sm:$0xff] }
  0xc2   : > { %v995_v8 = vadd.f32 %v994_v12, %v993_v3  ;;  %v1033_v18 = vadd.f32 %v1032_v13, %v1031_v9  ;;  %v1026_v19 = vadd.f32 %v1025_v14, %v1024_v10  ;;  %v1009_v23 = vadd.f32 %v1008_v11, %v1007_v0  ;;  %v1150_v3 = vld [vmem:[%s3335_s24 + $0x20] sm:$0xff]  ;;  %v1147_v9 = vld [vmem:[%s3335_s24 + $0x8] sm:$0xff] }
  0xc3   : > { %v1021_v21 = vadd.f32 %v1020_v15, %v1019_v5  ;;  %v1014_v22 = vadd.f32 %v1013_v16, %v1012_v7  ;;  %v1149_v5 = vld [vmem:[%s3335_s24 + $0x18] sm:$0xff]  ;;  %v1148_v7 = vld [vmem:[%s3335_s24 + $0x10] sm:$0xff]  ;;  %v1146_v10 = vld [vmem:[%s3335_s24] sm:$0xff] }
  0xc4   : > { %v1049_v26 = vsel %vm1048_vm4, %v995_v8, %v988_v17  ;;  %v1034_v27 = vrot.slane %v1033_v18, 2  ;;  %v1027_v28 = vrot.slane %v1026_v19, 2  ;;  %v2119_v14 = vld [vmem:[%s3337_s28] ss:$0 sm:$0xff]  ;;  %s2002_s28 = sshll.u32 %s700_s1, 4  ;;  %s2003_s28 = int_to_ptr.vmem [resolvable:$true] %s2002_s28 }
  0xc5   : > { %v1051_v29 = vsel %vm1050_vm5, %v1002_v20, %v1049_v26  ;;  %v1022_v30 = vrot.slane %v1021_v21, 1  ;;  %v1015_v31 = vrot.slane %v1014_v22, 1  ;;  %v1039_v16 = vld [vmem:[%s712_s22] sm:$0xff]  ;;  %v1513_v26 = vld [vmem:[%s3298_s9 + $0x70] sm:$0xff]  ;;  %s2479_s22 = scalar_lea.vmem %s2478_s29, 32  ;;  %p2480_p11 = scmp.lt.s32.totalorder %s2003_s28, %s2478_s29 }
  0xc6   : > { %v1035_v34 = vadd.f32 %v1034_v27, %v1033_v18  ;;  %v1028_v35 = vadd.f32 %v1027_v28, %v1026_v19  ;;  %v1053_v36 = vsel %vm1052_vm6, %v1009_v23, %v1051_v29  ;;  %v1514_v23 = vld [vmem:[%s3298_s9 + $0x78] sm:$0xff]  ;;  %v1512_v27 = vld [vmem:[%s3298_s9 + $0x68] sm:$0xff] }
  0xc7   : > { %v1023_v37 = vadd.f32 %v1022_v30, %v1021_v21  ;;  %v1016_v38 = vadd.f32 %v1015_v31, %v1014_v22  ;;  %v1233_v21 = vld [vmem:[%s3300_s11 + $0x8] sm:$0xff]  ;;  %v1232_v22 = vld [vmem:[%s3300_s11] sm:$0xff]  ;;  %2294 = vmatpush3.msra.mxu1 %v1514_v23 }
  0xc8   : > { %v1036_v39 = vrot.slane %v1035_v34, 1  ;;  %v1029_v40 = vrot.slane %v1028_v35, 1  ;;  %2295 = vmatprep.subr.mxu1 %v2542_v1  ;;  %v1401_v28 = vld [vmem:[%s3338_s6 + $0x8] sm:$0xff] }
  0xc9   : > { %v1055_v41 = vsel %vm1054_vm7, %v1016_v38, %v1053_v36  ;;  %2296 = vmatpush3.msra.mxu1 %v1513_v26  ;;  %v1400_v36 = vld [vmem:[%s3338_s6] sm:$0xff]  ;;  %s2473_s6 = scalar_lea.vmem %s2003_s28, 16 }
  0xca   : > { %v1037_v42 = vadd.f32 %v1036_v39, %v1035_v34  ;;  %v1030_v43 = vadd.f32 %v1029_v40, %v1028_v35  ;;  %v1057_v46 = vsel %vm1056_vm8, %v1023_v37, %v1055_v41  ;;  %2297 = vmatprep.subr.mxu1 %v2542_v1  ;;  %p2474_p6 = scmp.ne.s32.totalorder %s2003_s28, %s2473_s6  ;;  %p2481_p12 = scmp.lt.s32.totalorder %s2479_s22, %s2473_s6 }
  0xcb   : > { %2298 = vmatpush3.msra.mxu1 %v1512_v27 }
  0xcc   : > { %v1059_v47 = vsel %vm1058_vm9, %v1030_v43, %v1057_v46  ;;  %2299 = vmatprep.subr.mxu1 %v2542_v1  ;;  %p2475_p9 = pnand %p2474_p6, %p2693_p5  ;;  %p2482_p13 = por %p2481_p12, %p2480_p11 }
  0xcd   : > { %v1061_v49 = vsel %vm1060_vm10, %v1037_v42, %v1059_v47 }
  0xce   : > { %2242 = vmatmul.mubr.msk.f32.vlgmr.msra.gmra.mxu0 %vm812_vm2, %v1061_v49  ;;  %p2476_p10 = pneg %p2475_p9 }
  0xcf   : > { %2245 = vmatpush3.msra.mxu0 %v1161_v48  ;;  %2276 = vmatprep.mubr.msk.f32.mxu0 %vm2543_vm0, %v2542_v1 }
  0xd0   : > { %2246 = vmatprep.subr.mxu0 %v2542_v1  ;;  %p2483_p0 = pnand %p2482_p13, %p2476_p10 }
  0xd1   : > { %2247 = vmatpush3.msra.mxu0 %v1160_v50 }
  0xd2   : > { %2248 = vmatprep.subr.mxu0 %v2542_v1 }
  0xd3   : > { %2249 = vmatpush3.msra.mxu0 %v1159_v51 }
  0xd4   : > { %2250 = vmatprep.subr.mxu0 %v2542_v1 }
  0xd5   : > { %2251 = vmatpush3.msra.mxu0 %v1158_v52 }
  0xd6   : > { %2252 = vmatprep.subr.mxu0 %v2542_v1 }
  0xd7   : > { %2253 = vmatpush3.msra.mxu0 %v1157_v53 }
  0xd8   : > { %2254 = vmatprep.subr.mxu0 %v2542_v1 }
  0xd9   : > { %2255 = vmatpush3.msra.mxu0 %v1156_v54 }
  0xda   : > { %2256 = vmatprep.subr.mxu0 %v2542_v1 }
  0xdb   : > { %2257 = vmatpush3.msra.mxu0 %v1155_v55 }
  0xdc   : > { %2258 = vmatprep.subr.mxu0 %v2542_v1 }
  0xdd   : > { %2259 = vmatpush3.msra.mxu0 %v1154_v58 }
  0xde   : > { %2260 = vmatprep.subr.mxu0 %v2542_v1 }
  0xdf   : > { %2261 = vmatpush3.msra.mxu0 %v1153_v59 }
  0xe0   : > { %2262 = vmatprep.subr.mxu0 %v2542_v1 }
  0xe1   : > { %2263 = vmatpush3.msra.mxu0 %v1152_v60 }
  0xe2   : > { %2264 = vmatprep.subr.mxu0 %v2542_v1 }
  0xe3   : > { %2265 = vmatpush3.msra.mxu0 %v1151_v61 }
  0xe4   : > { %2266 = vmatprep.subr.mxu0 %v2542_v1 }
  0xe5   : > { %2267 = vmatpush3.msra.mxu0 %v1150_v3 }
  0xe6   : > { %2268 = vmatprep.subr.mxu0 %v2542_v1 }
  0xe7   : > { %2269 = vmatpush3.msra.mxu0 %v1149_v5 }
  0xe8   : > { %2270 = vmatprep.subr.mxu0 %v2542_v1 }
  0xe9   : > { %2271 = vmatpush3.msra.mxu0 %v1148_v7 }
  0xea   : > { %2272 = vmatprep.subr.mxu0 %v2542_v1 }
  0xeb   : > { %2273 = vmatpush3.msra.mxu0 %v1147_v9 }
  0xec   : > { %2274 = vmatprep.subr.mxu0 %v2542_v1 }
  0xed   : > { %2275 = vmatpush3.msra.mxu0 %v1146_v10 }
  0xee   : > { %2279 = vmatprep.subr.mxu0 %v2542_v1 }
  0xf2   : > { %v2895_v15 = vpop.xlane.xlu0 %808 }
  0xf3   : > { %vm1144_vm12 = vcmp.eq.f32.partialorder %v2895_v15, %v2119_v14 }
  0xfa   : > { %v2863_v62 = vpop.f32.mrf.mxu0 }
  0xfb   : > { %v897_v63 = vsel %vm892_vm11, %v2863_v62, -inf  ;;  %vm890_vm15 = vcmp.ne.f32.partialorder %v2863_v62, 0.0 }
  0xfc   : > { %898 = vmax.xlane.f32.xlu1 %v897_v63  ;;  %v2238_v0 = vpop.f32.mrf.mxu0 }
 0x185   : > { %v899_v11 = vpop.xlane.xlu1 %898 }
 0x186   : > { %v900_v12 = vsub.f32 %v2863_v62, %v899_v11 }
 0x188   : > { %v901_v13 = vmul.f32 1.442695, %v900_v12 }
 0x18a   : > { %2435 = vpow2.f32 %v901_v13 }
 0x18e   : > { %v1133_v17 = vpop.f32.mrf.mxu0 }
 0x18f   : > { %v1134_v8 = vadd.f32 %v1133_v17, %v1039_v16 }
 0x190   : > { %v2243_v18 = vpop.f32.mrf.mxu0 }
 0x191   : > { %2277 = vmatmul.mubr.msk.f32.vlgmr.msra.gmra.mxu0 %vm1144_vm12, %v1134_v8 }
 0x192   : > { %2283 = vmatprep.mubr.msk.f32.mxu0 %vm2543_vm0, %v2542_v1  ;;  %2280 = vmatpush3.msra.mxu0 %v1233_v21 }
 0x193   : > { %2281 = vmatprep.subr.mxu0 %v2542_v1 }
 0x194   : > { %2282 = vmatpush3.msra.mxu0 %v1232_v22 }
 0x195   : > { %2286 = vmatprep.subr.mxu0 %v2542_v1 }
 0x197   : > { %v2900_v19 = vpop.eup %2435 }
 0x198   : > { %v903_v20 = vsel %vm892_vm11, %v2900_v19, 0.0 }
 0x199   : > { %904 = vadd.xlane.f32.xlu1 %v903_v20 }
 0x251   : > { %v1228_v29 = vpop.f32.mrf.mxu0 }
 0x252   : > { %v1336_v30 = vmul.f32 %v1228_v29, %v2771_v25  ;;  %v1337_v31 = vmul.f32 %v1228_v29, %v2781_v33  ;;  %v1338_v34 = vmul.f32 %v1228_v29, %v2769_v24  ;;  %v1339_v35 = vmul.f32 %v1228_v29, %v2779_v32  ;;  %2284 = vmatmul.mubr.msk.f32.vlgmr.msra.gmra.mxu0 %vm1234_vm13, %v1228_v29 }
 0x253   : > { %v2278_v37 = vpop.f32.mrf.mxu0  ;;  %2287 = vmatpush3.msra.mxu0 %v1401_v28  ;;  %2290 = vmatprep.mubr.msk.f32.mxu0 %vm2543_vm0, %v2542_v1  ;;  %v1340_v38 = vmul.f32 %v1228_v29, %v2791_v45  ;;  %v1341_v25 = vmul.f32 %v1228_v29, %v2789_v44  ;;  %v1342_v33 = vmul.f32 %v1228_v29, %v2801_v57 }
 0x254   : > { %v1344_v24 = vsel %vm1234_vm13, %v1336_v30, 0.0  ;;  %v1351_v32 = vsel %vm1234_vm13, %v1337_v31, 0.0  ;;  %2288 = vmatprep.subr.mxu0 %v2542_v1  ;;  %v1343_v39 = vmul.f32 %v1228_v29, %v2799_v56  ;;  %v1358_v40 = vsel %vm1234_vm13, %v1338_v34, 0.0 }
 0x255   : > { %v1345_v41 = vrot.slane %v1344_v24, 4  ;;  %v1352_v42 = vrot.slane %v1351_v32, 4  ;;  %2289 = vmatpush3.msra.mxu0 %v1400_v36  ;;  %v1359_v43 = vrot.slane %v1358_v40, 4  ;;  %v1365_v45 = vsel %vm1234_vm13, %v1339_v35, 0.0 }
 0x256   : > { %v1366_v46 = vrot.slane %v1365_v45, 4  ;;  %v1372_v44 = vsel %vm1234_vm13, %v1340_v38, 0.0  ;;  %v1379_v57 = vsel %vm1234_vm13, %v1341_v25, 0.0  ;;  %v1386_v47 = vsel %vm1234_vm13, %v1342_v33, 0.0  ;;  %2328 = vmatprep.subr.mxu0 %v2542_v1 }
 0x257   : > { %v1346_v48 = vadd.f32 %v1345_v41, %v1344_v24  ;;  %v1353_v49 = vadd.f32 %v1352_v42, %v1351_v32  ;;  %v1360_v56 = vadd.f32 %v1359_v43, %v1358_v40  ;;  %v1373_v50 = vrot.slane %v1372_v44, 4 }
 0x258   : > { %v1367_v51 = vadd.f32 %v1366_v46, %v1365_v45  ;;  %v1380_v52 = vrot.slane %v1379_v57, 4  ;;  %v1387_v53 = vrot.slane %v1386_v47, 4  ;;  %v1393_v54 = vsel %vm1234_vm13, %v1343_v39, 0.0  ;;  %v1511_v45 = vld [vmem:[%s3298_s9 + $0x60] sm:$0xff]  ;;  %v1510_v46 = vld [vmem:[%s3298_s9 + $0x58] sm:$0xff] }
 0x259   : > { %v1347_v55 = vrot.slane %v1346_v48, 2  ;;  %v1354_v58 = vrot.slane %v1353_v49, 2  ;;  %v1361_v59 = vrot.slane %v1360_v56, 2  ;;  %v1374_v60 = vadd.f32 %v1373_v50, %v1372_v44  ;;  %2300 = vmatpush3.msra.mxu1 %v1511_v45  ;;  %v1509_v44 = vld [vmem:[%s3298_s9 + $0x50] sm:$0xff]  ;;  %v1503_v50 = vld [vmem:[%s3298_s9 + $0x20] sm:$0xff] }
 0x25a   : > { %v1368_v61 = vrot.slane %v1367_v51, 2  ;;  %v1381_v63 = vadd.f32 %v1380_v52, %v1379_v57  ;;  %v1388_v0 = vadd.f32 %v1387_v53, %v1386_v47  ;;  %v1394_v3 = vrot.slane %v1393_v54, 4  ;;  %2301 = vmatprep.subr.mxu1 %v2542_v1  ;;  %v1508_v57 = vld [vmem:[%s3298_s9 + $0x48] sm:$0xff]  ;;  %v1507_v47 = vld [vmem:[%s3298_s9 + $0x40] sm:$0xff]  ;;  %v1501_v52 = vld [vmem:[%s3298_s9 + $0x10] sm:$0xff] }
 0x25b   : > { %v1348_v5 = vadd.f32 %v1347_v55, %v1346_v48  ;;  %v1355_v7 = vadd.f32 %v1354_v58, %v1353_v49  ;;  %v1362_v9 = vadd.f32 %v1361_v59, %v1360_v56  ;;  %v1375_v10 = vrot.slane %v1374_v60, 2  ;;  %2302 = vmatpush3.msra.mxu1 %v1510_v46  ;;  %v1506_v48 = vld [vmem:[%s3298_s9 + $0x38] sm:$0xff]  ;;  %v1505_v49 = vld [vmem:[%s3298_s9 + $0x30] sm:$0xff]  ;;  %v1504_v56 = vld [vmem:[%s3298_s9 + $0x28] sm:$0xff] }
 0x25c   : > { %v1369_v11 = vadd.f32 %v1368_v61, %v1367_v51  ;;  %v1382_v12 = vrot.slane %v1381_v63, 2  ;;  %v1389_v13 = vrot.slane %v1388_v0, 2  ;;  %v1395_v14 = vadd.f32 %v1394_v3, %v1393_v54  ;;  %2303 = vmatprep.subr.mxu1 %v2542_v1  ;;  %v1502_v51 = vld [vmem:[%s3298_s9 + $0x18] sm:$0xff]  ;;  %v1500_v53 = vld [vmem:[%s3298_s9 + $0x8] sm:$0xff]  ;;  %v1499_v54 = vld [vmem:[%s3298_s9] sm:$0xff] }
 0x25d   : > { %v1349_v16 = vrot.slane %v1348_v5, 1  ;;  %v1356_v17 = vrot.slane %v1355_v7, 1  ;;  %v1363_v8 = vrot.slane %v1362_v9, 1  ;;  %v1376_v18 = vadd.f32 %v1375_v10, %v1374_v60  ;;  %2304 = vmatpush3.msra.mxu1 %v1509_v44  ;;  %v1586_v60 = vld [vmem:[%s3301_s12 + $0x8] sm:$0xff]  ;;  %v1585_v61 = vld [vmem:[%s3301_s12] sm:$0xff]  ;;  %v741_v46 = vld [vmem:[%s3304_s15 + $0x98] sm:$0xff] }
 0x25e   : > { %v1370_v20 = vrot.slane %v1369_v11, 1  ;;  %v1383_v21 = vadd.f32 %v1382_v12, %v1381_v63  ;;  %v1390_v22 = vadd.f32 %v1389_v13, %v1388_v0  ;;  %v1396_v23 = vrot.slane %v1395_v14, 2  ;;  %2305 = vmatprep.subr.mxu1 %v2542_v1  ;;  %v1402_v63 = vld [vmem:[%s716_s4] sm:$0xff]  ;;  %v740_v44 = vld [vmem:[%s3304_s15 + $0x90] sm:$0xff] }
 0x25f   : > { %v1350_v26 = vadd.f32 %v1349_v16, %v1348_v5  ;;  %v1357_v27 = vadd.f32 %v1356_v17, %v1355_v7  ;;  %v1364_v28 = vadd.f32 %v1363_v8, %v1362_v9  ;;  %v1377_v29 = vrot.slane %v1376_v18, 1  ;;  %2306 = vmatpush3.msra.mxu1 %v1508_v57  ;;  %v2123_v0 = vld [vmem:[%s3297_s8] ss:$0 sm:$0xff]  ;;  %v739_v57 = vld [vmem:[%s3304_s15 + $0x88] sm:$0xff] }
 0x260   : > { %v1384_v30 = vrot.slane %v1383_v21, 1  ;;  %v1391_v31 = vrot.slane %v1390_v22, 1  ;;  %v1397_v34 = vadd.f32 %v1396_v23, %v1395_v14  ;;  %v1371_v35 = vadd.f32 %v1370_v20, %v1369_v11  ;;  %2307 = vmatprep.subr.mxu1 %v2542_v1  ;;  %v742_v45 = vld [vmem:[%s3304_s15 + $0xa0] sm:$0xff] }
 0x261   : > { %v1411_v36 = vsel %vm1048_vm4, %v1357_v27, %v1350_v26  ;;  %v1378_v37 = vadd.f32 %v1377_v29, %v1376_v18  ;;  %2308 = vmatpush3.msra.mxu1 %v1507_v47  ;;  %vm1497_vm14 = vcmp.eq.f32.partialorder %v2895_v15, %v2123_v0  ;;  %v891_v18 = vsel %vm890_vm15, 1.0, %v2542_v1  ;;  %v738_v47 = vld [vmem:[%s3304_s15 + $0x80] sm:$0xff] }
 0x262   : > { %v1398_v38 = vrot.slane %v1397_v34, 1  ;;  %v1412_v25 = vsel %vm1050_vm5, %v1364_v28, %v1411_v36  ;;  %v1385_v33 = vadd.f32 %v1384_v30, %v1383_v21  ;;  %v1392_v32 = vadd.f32 %v1391_v31, %v1390_v22  ;;  %2309 = vmatprep.subr.mxu1 %v2542_v1  ;;  %v720_v31 = vld [vmem:[%s3302_s13 + $0x18] sm:$0xff] }
 0x263   : > { %v1413_v24 = vsel %vm1052_vm6, %v1371_v35, %v1412_v25  ;;  %2310 = vmatpush3.msra.mxu1 %v1506_v48  ;;  %v893_v20 = vsel %vm892_vm11, %v891_v18, -inf  ;;  %v718_v35 = vld [vmem:[%s3302_s13 + $0x8] sm:$0xff]  ;;  %v753_v36 = vld [vmem:[%s3304_s15 + $0xf8] sm:$0xff]  ;;  %v717_v25 = vld [vmem:[%s3302_s13] sm:$0xff] }
 0x264   : > { %v1414_v39 = vsel %vm1054_vm7, %v1378_v37, %v1413_v24  ;;  %v1399_v40 = vadd.f32 %v1398_v38, %v1397_v34  ;;  %2311 = vmatprep.subr.mxu1 %v2542_v1  ;;  %v719_v34 = vld [vmem:[%s3302_s13 + $0x10] sm:$0xff]  ;;  %v751_v38 = vld [vmem:[%s3304_s15 + $0xe8] sm:$0xff]  ;;  %v749_v24 = vld [vmem:[%s3304_s15 + $0xd8] sm:$0xff] }
 0x265   : > { %v1415_v41 = vsel %vm1056_vm8, %v1385_v33, %v1414_v39  ;;  %2312 = vmatpush3.msra.mxu1 %v1505_v49  ;;  %v752_v37 = vld [vmem:[%s3304_s15 + $0xf0] sm:$0xff]  ;;  %v750_v33 = vld [vmem:[%s3304_s15 + $0xe0] sm:$0xff]  ;;  %v747_v39 = vld [vmem:[%s3304_s15 + $0xc8] sm:$0xff] }
 0x266   : > { %v1416_v42 = vsel %vm1058_vm9, %v1392_v32, %v1415_v41  ;;  %2313 = vmatprep.subr.mxu1 %v2542_v1  ;;  %v748_v32 = vld [vmem:[%s3304_s15 + $0xd0] sm:$0xff]  ;;  %v745_v41 = vld [vmem:[%s3304_s15 + $0xb8] sm:$0xff] }
 0x267   : > { %v1417_v43 = vsel %vm1060_vm10, %v1399_v40, %v1416_v42  ;;  %2314 = vmatpush3.msra.mxu1 %v1504_v56  ;;  %v746_v40 = vld [vmem:[%s3304_s15 + $0xc0] sm:$0xff]  ;;  %v744_v42 = vld [vmem:[%s3304_s15 + $0xb0] sm:$0xff]  ;;  %v737_v48 = vld [vmem:[%s3304_s15 + $0x78] sm:$0xff] }
 0x268   : > { %2291 = vmatmul.mubr.msk.f32.vlgmr.msra.gmra.mxu0 %vm1234_vm13, %v1417_v43  ;;  %2315 = vmatprep.subr.mxu1 %v2542_v1  ;;  %v743_v43 = vld [vmem:[%s3304_s15 + $0xa8] sm:$0xff]  ;;  %v736_v49 = vld [vmem:[%s3304_s15 + $0x70] sm:$0xff] }
 0x269   : > { %2332 = vmatprep.mubr.msk.f32.mxu0 %vm2543_vm0, %v2542_v1  ;;  %2316 = vmatpush3.msra.mxu1 %v1503_v50  ;;  %v735_v56 = vld [vmem:[%s3304_s15 + $0x68] sm:$0xff]  ;;  %v734_v50 = vld [vmem:[%s3304_s15 + $0x60] sm:$0xff] }
 0x26a   : > { %2317 = vmatprep.subr.mxu1 %v2542_v1  ;;  %2329 = vmatpush3.msra.mxu0 %v1586_v60  ;;  %v905_v60 = vpop.xlane.xlu1 %904 }
 0x26b   : > { %2318 = vmatpush3.msra.mxu1 %v1502_v51  ;;  %2330 = vmatprep.subr.mxu0 %v2542_v1  ;;  %v733_v51 = vld [vmem:[%s3304_s15 + $0x58] sm:$0xff] }
 0x26c   : > { %2319 = vmatprep.subr.mxu1 %v2542_v1  ;;  %2331 = vmatpush3.msra.mxu0 %v1585_v61 }
 0x26d   : > { %2320 = vmatpush3.msra.mxu1 %v1501_v52  ;;  %2335 = vmatprep.subr.mxu0 %v2542_v1  ;;  %v732_v52 = vld [vmem:[%s3304_s15 + $0x50] sm:$0xff] }
 0x26e   : > { %2321 = vmatprep.subr.mxu1 %v2542_v1 }
 0x26f   : > { %2322 = vmatpush3.msra.mxu1 %v1500_v53  ;;  %v731_v53 = vld [vmem:[%s3304_s15 + $0x48] sm:$0xff] }
 0x270   : > { %2323 = vmatprep.subr.mxu1 %v2542_v1 }
 0x271   : > { %2324 = vmatpush3.msra.mxu1 %v1499_v54  ;;  %v730_v54 = vld [vmem:[%s3304_s15 + $0x40] sm:$0xff] }
 0x272   : > { %1773 = vmatprep.subr.mxu1 %v753_v36 }
 0x312   : > { %v1304_v55 = vpop.f32.mrf.mxu0 }
 0x313   : > { %v1314_v58 = vsel %vm892_vm11, %v1304_v55, -inf  ;;  %vm1308_vm2 = vcmp.ne.f32.partialorder %v1304_v55, 0.0 }
 0x314   : > { %1315 = vmax.xlane.f32.xlu0 %v1314_v58  ;;  %v2285_v59 = vpop.f32.mrf.mxu0  ;;  %v1309_v29 = vsel %vm1308_vm2, 1.0, %v2542_v1  ;;  %v728_v58 = vld [vmem:[%s3304_s15 + $0x30] sm:$0xff] }
 0x315   : > { %v1310_v30 = vsel %vm892_vm11, %v1309_v29, -inf  ;;  %v727_v59 = vld [vmem:[%s3304_s15 + $0x28] sm:$0xff] }
 0x328   : > { %v1486_v3 = vpop.f32.mrf.mxu0 }
 0x329   : > { %v1487_v5 = vadd.f32 %v1486_v3, %v1402_v63 }
 0x32a   : > { %v2292_v7 = vpop.f32.mrf.mxu0 }
 0x32b   : > { %2326 = vmatmul.mubr.msk.f32.vlgmr.msra.gmra.mxu1 %vm1497_vm14, %v1487_v5 }
 0x32c   : > { %1837 = vmatprep.mubr.f32.mxu1 %v2542_v1  ;;  %1774 = vmatpush1.msra.mxu1 %v752_v37 }
 0x32d   : > { %1775 = vmatprep.subr.mxu1 %v751_v38 }
 0x32e   : > { %1776 = vmatpush1.msra.mxu1 %v750_v33 }
 0x32f   : > { %1777 = vmatprep.subr.mxu1 %v749_v24 }
 0x330   : > { %1778 = vmatpush1.msra.mxu1 %v748_v32 }
 0x331   : > { %1779 = vmatprep.subr.mxu1 %v747_v39  ;;  %v725_v39 = vld [vmem:[%s3304_s15 + $0x18] sm:$0xff] }
 0x332   : > { %1780 = vmatpush1.msra.mxu1 %v746_v40  ;;  %v724_v40 = vld [vmem:[%s3304_s15 + $0x10] sm:$0xff] }
 0x333   : > { %1781 = vmatprep.subr.mxu1 %v745_v41  ;;  %v723_v41 = vld [vmem:[%s3304_s15 + $0x8] sm:$0xff] }
 0x334   : > { %1782 = vmatpush1.msra.mxu1 %v744_v42  ;;  %v722_v42 = vld [vmem:[%s3304_s15] sm:$0xff] }
 0x335   : > { %1783 = vmatprep.subr.mxu1 %v743_v43  ;;  %v786_v43 = vld [vmem:[#allocation2 + $0xf8] sm:$0xff] }
 0x336   : > { %1784 = vmatpush1.msra.mxu1 %v742_v45  ;;  %v770_v45 = vld [vmem:[#allocation2 + $0x78] sm:$0xff] }
 0x337   : > { %1785 = vmatprep.subr.mxu1 %v741_v46  ;;  %v785_v46 = vld [vmem:[#allocation2 + $0xf0] sm:$0xff] }
 0x338   : > { %1786 = vmatpush1.msra.mxu1 %v740_v44  ;;  %v769_v44 = vld [vmem:[#allocation2 + $0x70] sm:$0xff] }
 0x339   : > { %1787 = vmatprep.subr.mxu1 %v739_v57  ;;  %v784_v57 = vld [vmem:[#allocation2 + $0xe8] sm:$0xff] }
 0x33a   : > { %1788 = vmatpush1.msra.mxu1 %v738_v47  ;;  %v768_v47 = vld [vmem:[#allocation2 + $0x68] sm:$0xff] }
 0x33b   : > { %1789 = vmatprep.subr.mxu1 %v737_v48  ;;  %v783_v48 = vld [vmem:[#allocation2 + $0xe0] sm:$0xff] }
 0x33c   : > { %1790 = vmatpush1.msra.mxu1 %v736_v49  ;;  %v767_v49 = vld [vmem:[#allocation2 + $0x60] sm:$0xff] }
 0x33d   : > { %1791 = vmatprep.subr.mxu1 %v735_v56  ;;  %v782_v56 = vld [vmem:[#allocation2 + $0xd8] sm:$0xff] }
 0x33e   : > { %1792 = vmatpush1.msra.mxu1 %v734_v50  ;;  %v766_v50 = vld [vmem:[#allocation2 + $0x58] sm:$0xff] }
 0x33f   : > { %1793 = vmatprep.subr.mxu1 %v733_v51  ;;  %v781_v51 = vld [vmem:[#allocation2 + $0xd0] sm:$0xff] }
 0x340   : > { %1794 = vmatpush1.msra.mxu1 %v732_v52  ;;  %v765_v52 = vld [vmem:[#allocation2 + $0x50] sm:$0xff] }
 0x341   : > { %1795 = vmatprep.subr.mxu1 %v731_v53  ;;  %v780_v53 = vld [vmem:[#allocation2 + $0xc8] sm:$0xff] }
 0x342   : > { %1796 = vmatpush1.msra.mxu1 %v730_v54  ;;  %v764_v54 = vld [vmem:[#allocation2 + $0x48] sm:$0xff] }
 0x39d   : > { %v1316_v11 = vpop.xlane.xlu0 %1315 }
 0x39e   : > { %v1317_v12 = vsub.f32 %v1304_v55, %v1316_v11  ;;  %v729_v55 = vld [vmem:[%s3304_s15 + $0x38] sm:$0xff] }
 0x39f   : > { %1797 = vmatprep.subr.mxu1 %v729_v55  ;;  %v779_v55 = vld [vmem:[#allocation2 + $0xc0] sm:$0xff] }
 0x3a0   : > { %v1318_v13 = vmul.f32 1.442695, %v1317_v12  ;;  %1798 = vmatpush1.msra.mxu1 %v728_v58  ;;  %v763_v58 = vld [vmem:[#allocation2 + $0x40] sm:$0xff] }
 0x3a1   : > { %1799 = vmatprep.subr.mxu1 %v727_v59  ;;  %v778_v59 = vld [vmem:[#allocation2 + $0xb8] sm:$0xff] }
 0x3a2   : > { %2437 = vpow2.f32 %v1318_v13 }
 0x3af   : > { %v3034_v17 = vpop.eup %2437 }
 0x3b0   : > { %v1320_v8 = vsel %vm892_vm11, %v3034_v17, 0.0 }
 0x3eb   : > { %v1581_v9 = vpop.f32.mrf.mxu1 }
 0x3ec   : > { %2333 = vmatmul.mubr.msk.f32.vlgmr.msra.gmra.mxu0 %vm1234_vm13, %v1581_v9 }
 0x3ed   : > { %v2327_v10 = vpop.f32.mrf.mxu1  ;;  %2343 = vmatprep.mubr.msk.f32.mxu0 %vm2543_vm0, %v2542_v1  ;;  %2336 = vmatpush3.msra.mxu0 %v720_v31 }
 0x3ee   : > { %2337 = vmatprep.subr.mxu0 %v2542_v1 }
 0x3ef   : > { %2338 = vmatpush3.msra.mxu0 %v719_v34 }
 0x3f0   : > { %2339 = vmatprep.subr.mxu0 %v2542_v1 }
 0x3f1   : > { %2340 = vmatpush3.msra.mxu0 %v718_v35 }
 0x3f2   : > { %2341 = vmatprep.subr.mxu0 %v2542_v1 }
 0x3f3   : > { %2342 = vmatpush3.msra.mxu0 %v717_v25 }
 0x3f4   : > { %2182 = vmatprep.subr.mxu0 %v786_v43  ;;  %v787_v43 = vld [vmem:[%s3307_s18] sm:$0x1] }
 0x4ac   : > { %v1656_v14 = vpop.f32.mrf.mxu0 }
 0x4ad   : > { %v1666_v16 = vsel %vm892_vm11, %v1656_v14, -inf  ;;  %vm1660_vm1 = vcmp.ne.f32.partialorder %v1656_v14, 0.0 }
 0x4ae   : > { %1667 = vmax.xlane.f32.xlu0 %v1666_v16  ;;  %v2334_v15 = vpop.f32.mrf.mxu0  ;;  %v1661_v21 = vsel %vm1660_vm1, 1.0, %v2542_v1 }
 0x4af   : > { %v1662_v22 = vsel %vm892_vm11, %v1661_v21, -inf }
 0x4b2   : > { %1321 = vadd.xlane.f32.xlu0 %v1320_v8 }
 0x4b6   : > { %894 = vmax.xlane.f32.xlu0 %v893_v20 }
 0x4ba   : > { %1663 = vmax.xlane.f32.xlu0 %v1662_v22 }
 0x537   : > { %v1668_v23 = vpop.xlane.xlu0 %1667 }
 0x538   : > { %v1669_v26 = vsub.f32 %v1656_v14, %v1668_v23 }
 0x53a   : > { %v1670_v27 = vmul.f32 1.442695, %v1669_v26 }
 0x53b   : > { %v1322_v61 = vpop.xlane.xlu0 %1321 }
 0x53c   : > { %2439 = vpow2.f32 %v1670_v27 }
 0x53d   : > { %2441 = vrcp.f32 %v905_v60  ;;  %v762_v60 = vld [vmem:[#allocation2 + $0x38] sm:$0xff] }
 0x53e   : > { %2443 = vrcp.f32 %v1322_v61  ;;  %v777_v61 = vld [vmem:[#allocation2 + $0xb0] sm:$0xff] }
 0x53f   : > { %v895_v63 = vpop.xlane.xlu0 %894 }
 0x540   : > { %vm896_vm3 = vcmp.gt.f32.partialorder %v895_v63, 0.0  ;;  %v761_v63 = vld [vmem:[#allocation2 + $0x30] sm:$0xff] }
 0x543   : > { %v1664_v20 = vpop.xlane.xlu0 %1663 }
 0x544   : > { %vm1665_vm5 = vcmp.gt.f32.partialorder %v1664_v20, 0.0  ;;  %v756_v20 = vld [vmem:[#allocation2 + $0x8] sm:$0xff] }
 0x549   : > { %v3043_v62 = vpop.eup %2439 }
 0x54a   : > { %v1672_v28 = vsel %vm892_vm11, %v3043_v62, 0.0  ;;  %v2442_v0 = vpop.eup %2441 }
 0x54b   : > { %1673 = vadd.xlane.f32.xlu1 %v1672_v28  ;;  %v907_v3 = vmul.f32 %v2442_v0, %v2900_v19  ;;  %v2444_v7 = vpop.eup %2443  ;;  %v776_v0 = vld [vmem:[#allocation2 + $0xa8] sm:$0xff] }
 0x54c   : > { %v1324_v12 = vmul.f32 %v2444_v7, %v3034_v17  ;;  %v759_v7 = vld [vmem:[#allocation2 + $0x20] sm:$0xff] }
 0x54d   : > { %v910_v9 = vsel %vm896_vm3, %v907_v3, 0.0  ;;  %v760_v3 = vld [vmem:[#allocation2 + $0x28] sm:$0xff] }
 0x54e   : > { %v911_v10 = vsel %vm892_vm11, %v910_v9, 0.0  ;;  %v721_v9 = vld [vmem:[%s3303_s14] sm:$0x1] }
 0x54f   : > { %1311 = vmax.xlane.f32.xlu1 %v1310_v30  ;;  %v912_v14 = vrot.slane %v911_v10, 4 }
 0x551   : > { %v913_v18 = vadd.f32 %v912_v14, %v911_v10  ;;  %v774_v14 = vld [vmem:[#allocation2 + $0x98] sm:$0xff] }
 0x553   : > { %v914_v22 = vrot.slane %v913_v18, 2 }
 0x555   : > { %v915_v17 = vadd.f32 %v914_v22, %v913_v18  ;;  %v772_v18 = vld [vmem:[#allocation2 + $0x88] sm:$0xff]  ;;  %v803_v22 = vld [vmem:[%s3308_s19 + $0x78] sm:$0xff] }
 0x557   : > { %v916_v34 = vrot.slane %v915_v17, 1 }
 0x559   : > { %v917_v38 = vadd.f32 %v916_v34, %v915_v17  ;;  %v798_v17 = vld [vmem:[%s3308_s19 + $0x50] sm:$0xff] }
 0x55a   : > { %v794_v34 = vld [vmem:[%s3308_s19 + $0x30] sm:$0xff] }
 0x5d4   : > { %v1674_v5 = vpop.xlane.xlu1 %1673 }
 0x5d5   : > { %2445 = vrcp.f32 %v1674_v5  ;;  %v775_v5 = vld [vmem:[#allocation2 + $0xa0] sm:$0xff] }
 0x5d8   : > { %v1312_v11 = vpop.xlane.xlu1 %1311 }
 0x5d9   : > { %vm1313_vm4 = vcmp.gt.f32.partialorder %v1312_v11, 0.0 }
 0x5da   : > { %v1327_v13 = vsel %vm1313_vm4, %v1324_v12, 0.0 }
 0x5db   : > { %v1328_v16 = vsel %vm892_vm11, %v1327_v13, 0.0 }
 0x5dc   : > { %v1329_v15 = vrot.slane %v1328_v16, 4 }
 0x5de   : > { %v1330_v8 = vadd.f32 %v1329_v15, %v1328_v16  ;;  %v758_v16 = vld [vmem:[#allocation2 + $0x18] sm:$0xff]  ;;  %v773_v15 = vld [vmem:[#allocation2 + $0x90] sm:$0xff] }
 0x5e0   : > { %v1331_v21 = vrot.slane %v1330_v8, 2 }
 0x5e2   : > { %v2446_v19 = vpop.eup %2445  ;;  %v1332_v27 = vadd.f32 %v1331_v21, %v1330_v8  ;;  %v757_v8 = vld [vmem:[#allocation2 + $0x10] sm:$0xff]  ;;  %v771_v21 = vld [vmem:[#allocation2 + $0x80] sm:$0xff] }
 0x5e3   : > { %v1676_v23 = vmul.f32 %v2446_v19, %v3043_v62  ;;  %v726_v62 = vld [vmem:[%s3304_s15 + $0x20] sm:$0xff] }
 0x5e4   : > { %v1333_v30 = vrot.slane %v1332_v27, 1  ;;  %1800 = vmatpush1.msra.mxu1 %v726_v62  ;;  %v755_v19 = vld [vmem:[#allocation2] sm:$0xff] }
 0x5e5   : > { %v1679_v26 = vsel %vm1665_vm5, %v1676_v23, 0.0  ;;  %1801 = vmatprep.subr.mxu1 %v725_v39  ;;  %v802_v23 = vld [vmem:[%s3308_s19 + $0x70] sm:$0xff] }
 0x5e6   : > { %v1680_v28 = vsel %vm892_vm11, %v1679_v26, 0.0  ;;  %v1334_v36 = vadd.f32 %v1333_v30, %v1332_v27  ;;  %1802 = vmatpush1.msra.mxu1 %v724_v40  ;;  %v801_v26 = vld [vmem:[%s3308_s19 + $0x68] sm:$0xff]  ;;  %v800_v27 = vld [vmem:[%s3308_s19 + $0x60] sm:$0xff] }
 0x5e7   : > { %v1681_v29 = vrot.slane %v1680_v28, 4  ;;  %1803 = vmatprep.subr.mxu1 %v723_v41  ;;  %v796_v30 = vld [vmem:[%s3308_s19 + $0x40] sm:$0xff] }
 0x5e8   : > { %v1335_v33 = vadd.f32 %v1334_v36, %v917_v38  ;;  %1804 = vmatpush1.msra.mxu1 %v722_v42  ;;  %v754_v36 = vld [vmem:[%s3305_s16] sm:$0x3] }
 0x5e9   : > { %v1682_v31 = vadd.f32 %v1681_v29, %v1680_v28  ;;  %2346 = vmatprep.subr.mxu1 %v2542_v1  ;;  %v799_v28 = vld [vmem:[%s3308_s19 + $0x58] sm:$0xff]  ;;  %v797_v29 = vld [vmem:[%s3308_s19 + $0x48] sm:$0xff]  ;;  %v1770_v38 = vrot.slane %v754_v36, %v927_v6  ;;  %v792_v40 = vld [vmem:[%s3308_s19 + $0x20] sm:$0xff] }
 0x5ea   : > { %v789_v6 = vld [vmem:[%s3308_s19 + $0x8] sm:$0xff]  ;;  %v788_v41 = vld [vmem:[%s3308_s19] sm:$0xff] }
 0x5eb   : > { %v1683_v35 = vrot.slane %v1682_v31, 2 }
 0x5ed   : > { %v1684_v37 = vadd.f32 %v1683_v35, %v1682_v31  ;;  %v795_v31 = vld [vmem:[%s3308_s19 + $0x38] sm:$0xff]  ;;  %v793_v35 = vld [vmem:[%s3308_s19 + $0x28] sm:$0xff] }
 0x5ef   : > { %v1685_v25 = vrot.slane %v1684_v37, 1 }
 0x5f1   : > { %v1686_v24 = vadd.f32 %v1685_v25, %v1684_v37  ;;  %v1766_v37 = vrot.slane %v754_v36, %v920_v4  ;;  %v790_v4 = vld [vmem:[%s3308_s19 + $0x10] sm:$0xff] }
 0x5f3   : > { %v1687_v32 = vadd.f32 %v1686_v24, %v1335_v33 }
 0x5f5   : > { %2344 = vmatmul.mubr.msk.f32.vlgmr.msra.gmra.mxu0 %vm892_vm11, %v1687_v32 }
 0x5f6   : > { %2183 = vmatpush3.msra.mxu0 %v770_v45 }
 0x5f7   : > { %2184 = vmatprep.subr.mxu0 %v785_v46 }
 0x5f8   : > { %2185 = vmatpush3.msra.mxu0 %v769_v44 }
 0x5f9   : > { %2186 = vmatprep.subr.mxu0 %v784_v57 }
 0x5fa   : > { %2187 = vmatpush3.msra.mxu0 %v768_v47  ;;  %v804_v47 = vld [vmem:[%s3309_s20] sm:$0x1] }
 0x5fb   : > { %2188 = vmatprep.subr.mxu0 %v783_v48 }
 0x5fc   : > { %2189 = vmatpush3.msra.mxu0 %v767_v49 }
 0x5fd   : > { %2190 = vmatprep.subr.mxu0 %v782_v56 }
 0x5fe   : > { %2191 = vmatpush3.msra.mxu0 %v766_v50 }
 0x5ff   : > { %2192 = vmatprep.subr.mxu0 %v781_v51 }
 0x600   : > { %2193 = vmatpush3.msra.mxu0 %v765_v52 }
 0x601   : > { %2194 = vmatprep.subr.mxu0 %v780_v53 }
 0x602   : > { %2195 = vmatpush3.msra.mxu0 %v764_v54 }
 0x603   : > { %2196 = vmatprep.subr.mxu0 %v779_v55 }
 0x604   : > { %2197 = vmatpush3.msra.mxu0 %v763_v58 }
 0x605   : > { %2198 = vmatprep.subr.mxu0 %v778_v59 }
 0x606   : > { %2199 = vmatpush3.msra.mxu0 %v762_v60 }
 0x607   : > { %2200 = vmatprep.subr.mxu0 %v777_v61 }
 0x608   : > { %2201 = vmatpush3.msra.mxu0 %v761_v63 }
 0x609   : > { %2202 = vmatprep.subr.mxu0 %v776_v0 }
 0x60a   : > { %2203 = vmatpush3.msra.mxu0 %v760_v3 }
 0x60b   : > { %2204 = vmatprep.subr.mxu0 %v775_v5 }
 0x60c   : > { %2205 = vmatpush3.msra.mxu0 %v759_v7 }
 0x60d   : > { %2206 = vmatprep.subr.mxu0 %v774_v14 }
 0x60e   : > { %2207 = vmatpush3.msra.mxu0 %v758_v16 }
 0x60f   : > { %2208 = vmatprep.subr.mxu0 %v773_v15 }
 0x610   : > { %2209 = vmatpush3.msra.mxu0 %v757_v8 }
 0x611   : > { %2210 = vmatprep.subr.mxu0 %v772_v18 }
 0x612   : > { %2211 = vmatpush3.msra.mxu0 %v756_v20 }
 0x613   : > { %2212 = vmatprep.subr.mxu0 %v771_v21 }
 0x614   : > { %2213 = vmatpush3.msra.mxu0 %v755_v19 }
 0x6b5   : > { %v1757_v10 = vpop.f32.mrf.mxu0 }
 0x6b6   : > { %v1758_v11 = vadd.f32 %v1757_v10, %v721_v9 }
 0x6b7   : > { %v2345_v12 = vpop.f32.mrf.mxu0 }
 0x6b8   : > { %v1761_v13 = vmax.f32 %v1758_v11, 0.0 }
 0x6ba   : > { %1838 = vmatmul.mubr.f32.vlgmr.msra.gmra.mxu1 %v1761_v13 }
 0x6bb   : > { %2378 = vmatprep.mubr.msk.f32.mxu1 %vm2543_vm0, %v2542_v1  ;;  %2347 = vmatpush3.msra.mxu1 %v803_v22  ;;  %vm1987_vm0 = vcmask 32768  }
 0x6bc   : > { %2348 = vmatprep.subr.mxu1 %v2542_v1 }
 0x6bd   : > { %2349 = vmatpush3.msra.mxu1 %v802_v23 }
 0x6be   : > { %2350 = vmatprep.subr.mxu1 %v2542_v1 }
 0x6bf   : > { %2351 = vmatpush3.msra.mxu1 %v801_v26 }
 0x6c0   : > { %2352 = vmatprep.subr.mxu1 %v2542_v1 }
 0x6c1   : > { %2353 = vmatpush3.msra.mxu1 %v800_v27 }
 0x6c2   : > { %2354 = vmatprep.subr.mxu1 %v2542_v1 }
 0x6c3   : > { %2355 = vmatpush3.msra.mxu1 %v799_v28 }
 0x6c4   : > { %2356 = vmatprep.subr.mxu1 %v2542_v1 }
 0x6c5   : > { %2357 = vmatpush3.msra.mxu1 %v798_v17 }
 0x6c6   : > { %2358 = vmatprep.subr.mxu1 %v2542_v1 }
 0x6c7   : > { %2359 = vmatpush3.msra.mxu1 %v797_v29 }
 0x6c8   : > { %2360 = vmatprep.subr.mxu1 %v2542_v1 }
 0x6c9   : > { %2361 = vmatpush3.msra.mxu1 %v796_v30 }
 0x6ca   : > { %2362 = vmatprep.subr.mxu1 %v2542_v1 }
 0x6cb   : > { %2363 = vmatpush3.msra.mxu1 %v795_v31 }
 0x6cc   : > { %2364 = vmatprep.subr.mxu1 %v2542_v1 }
 0x6cd   : > { %2365 = vmatpush3.msra.mxu1 %v794_v34 }
 0x6ce   : > { %2366 = vmatprep.subr.mxu1 %v2542_v1 }
 0x6cf   : > { %2367 = vmatpush3.msra.mxu1 %v793_v35 }
 0x6d0   : > { %2368 = vmatprep.subr.mxu1 %v2542_v1 }
 0x6d1   : > { %2369 = vmatpush3.msra.mxu1 %v792_v40 }
 0x6d2   : > { %2370 = vmatprep.subr.mxu1 %v2542_v1 }
 0x6d3   : > { %2371 = vmatpush3.msra.mxu1 %v791_v2 }
 0x6d4   : > { %2372 = vmatprep.subr.mxu1 %v2542_v1 }
 0x6d5   : > { %2373 = vmatpush3.msra.mxu1 %v790_v4 }
 0x6d6   : > { %2374 = vmatprep.subr.mxu1 %v2542_v1 }
 0x6d7   : > { %2375 = vmatpush3.msra.mxu1 %v789_v6 }
 0x6d8   : > { %2376 = vmatprep.subr.mxu1 %v2542_v1 }
 0x6d9   : > { %2377 = vmatpush3.msra.mxu1 %v788_v41 }
 0x77a   : > { %v1839_v25 = vpop.f32.mrf.mxu1 }
 0x77b   : > { %v1840_v33 = vadd.f32 %v1839_v25, %v1766_v37 }
 0x77c   : > { %v1841_v24 = vpop.f32.mrf.mxu1 }
 0x77d   : > { %v1842_v32 = vadd.f32 %v1841_v24, %v1770_v38  ;;  %v1844_v39 = vmax.f32 %v1840_v33, 0.0 }
 0x77f   : > { %v1845_v62 = vmax.f32 %v1842_v32, 0.0 }
 0x781   : > { %1910 = vmatprep.mubr.f32.mxu0 %v1845_v62 }
 0x782   : > { %1911 = vmatmul.mubr.f32.vlgmr.msra.gmra.mxu0 %v1844_v39 }
 0x842   : > { %v2214_v42 = vpop.f32.mrf.mxu0 }
 0x844   : > { %v2215_v45 = vpop.f32.mrf.mxu0 }
 0x845   : > { %v2216_v46 = vadd.f32 %v2215_v45, %v2214_v42 }
 0x847   : > { %v1913_v44 = vadd.f32 %v2216_v46, %v787_v43 }
 0x849   : > { %v1916_v57 = vmax.f32 %v1913_v44, 0.0 }
 0x84b   : > { %2379 = vmatmul.mubr.f32.vlgmr.msra.gmra.mxu1 %v1916_v57 }
 0x90b   : > { %v1983_v1 = vpop.f32.mrf.mxu1 }
 0x90c   : > { %v1984_v48 = vadd.f32 %v1983_v1, %v804_v47 }
 0x90d   : > { %v2380_v49 = vpop.f32.mrf.mxu1 }
 0x90e   : > { %1988 = vst.msk [vmem:[%s700_s1] sm:$0x1] %vm1987_vm0, %v1984_v48 }
 0x90f   : > { %2486 = shalt.err (!%p2483_p0)
}
 0x910   : > { %s2487_s23 = scalar_lea.hbm %s3254_s26, 16  ;;  %s2491_s0 = scalar_lea.hbm %s3310_s21, 32 }
 0x911   : > { %p2488_p1 = scmp.ne.s32.totalorder %s3254_s26, %s2487_s23  ;;  %p2492_p4 = scmp.lt.s32.totalorder %s3254_s26, %s3310_s21 }
 0x912   : > { %p2493_p7 = scmp.lt.s32.totalorder %s2491_s0, %s2487_s23 }
 0x913   : > { %p2489_p2 = pnand %p2488_p1, %p2693_p5 }
 0x914   : > { %p2494_p8 = por %p2493_p7, %p2492_p4 }
 0x915   : > { %p2490_p3 = pneg %p2489_p2 }
 0x917   : > { %p2495_p6 = pnand %p2494_p8, %p2490_p3 }
 0x919   : > { %2498 = shalt.err (!%p2495_p6)
}
 0x91a   : > { %2385 = dma.vmem_to_hbm [thread:$0]  (%p2693_p5), %s2003_s28, 16, %s3254_s26, %s1990_s17  }
 0x91b PF: > { %s3339_s6 = sld [smem:[#allocation11_spill]]  ;;  %p2397_p9 = scmp.ge.s32.totalorder %s2537_s27, 2 }
 0x91c   : > { %s2014_s29 = sand.u32 1, %s2525_s2  }
 0x91d   : > { %s2015_s22 = scalar_lea.sflag [#allocation4], %s2014_s29 }
 0x921   : > { %p3340_p10 = scmp.ne.s32.totalorder %s3339_s6, 0 }
 0x923   : > { %p2392_p11 = pnand %p2397_p9, %p3340_p10 }
 0x925   : > { %p2393_p12 = pneg %p2392_p11 }
 0x927   : > { %2520 = dma.done.wait (%p2393_p12), %s2015_s22, 16  }
 0x928   : > { %2522 = vsyncadd (%p2393_p12), %s2015_s22, 4294967280  ;;  %s3341_s27 = sld [smem:[#allocation9_spill]]  ;;  %s3344_s2 = smov %s2529_s25 }
 0x929   : > { %s3342_s23 = sld [smem:[#allocation8_spill]] }
 0x92a   : > { %s3343_s26 = sld [smem:[#allocation10_spill]] }
 0x92e   : > { %p32_p13 = scmp.ge.s32.totalorder %s3341_s27, 4  }
 0x92f   : > { %s3345_s25 = smov %s3342_s23 }
 0x930   :  { %34 = sbr.rel (!%p32_p13) target bundleno = 13 (0xd), region = 153 }
 0x935   :  { %2019 = vsyncpa [#allocation3], 1 }
 0x936   :  { %2021 = vsyncpa [#allocation3 + $0x1], 1 }
 0x937   :  { %2022 = vsyncpa [#allocation4], 1 }
 0x938   :  { %2024 = vsyncpa [#allocation4 + $0x1], 1 }

</bundles_post_ra>
